<compile_context>
chip_gen: v7x
topology: tpu7x:2x2x1
jax: 0.10.0
libtpu: 0.0.40
codegen_flags: <defaults>
</compile_context>

<pallas_src>
import functools

import jax
import jax.numpy as jnp
from jax import lax
from jax.experimental import pallas as pl
from jax.experimental.pallas import tpu as pltpu


# ----------------------------------------------------------------------------
# Pass 1: conv tile (taps folded into the contraction) + BN partial statistics
# accumulated in a VMEM scratch across the row-tile axis.
# ----------------------------------------------------------------------------
def _make_conv_stats_kernel(tile_m, c_out_pad, tap_offsets, rows_per_step):
    """tap_offsets is None  -> the x block already holds the (tile_m, K) patch.
       tap_offsets is tuple -> the x block is the whole flattened padded image;
                               the kernel slices tile_m rows per KH tap."""

    def kernel(x_ref, w_ref, y_ref, psum_ref, pm2_ref, sum_scr, m2_scr):
        yy = pl.program_id(1)

        if tap_offsets is None:
            acc = jnp.dot(x_ref[0], w_ref[0], preferred_element_type=jnp.float32)
        else:
            base = yy * rows_per_step
            acc = jnp.zeros((tile_m, c_out_pad), jnp.float32)
            for i, off in enumerate(tap_offsets):
                lhs = x_ref[0, pl.ds(base + off, tile_m), :]
                acc = acc + jnp.dot(lhs, w_ref[i],
                                    preferred_element_type=jnp.float32)

        # Conv tile -> bf16 writeback (halves HBM traffic); statistics are
        # taken from the f32 accumulator *before* the cast.
        y_ref[0] = acc.astype(y_ref.dtype)

        m_b = float(tile_m)
        s_b = jnp.sum(acc, axis=0, keepdims=True)                 # (1, Cp)
        mu_b = s_b * (1.0 / m_b)
        d = acc - mu_b
        m2_b = jnp.sum(d * d, axis=0, keepdims=True)              # (1, Cp)

        @pl.when(yy == 0)
        def _():
            sum_scr[...] = s_b
            m2_scr[...] = m2_b

        @pl.when(yy > 0)
        def _():
            # Chan / Welford merge of (count, sum, M2) partials.
            n_a = yy.astype(jnp.float32) * m_b
            mean_a = sum_scr[...] / n_a
            delta = mu_b - mean_a
            m2_scr[...] = (m2_scr[...] + m2_b
                           + delta * delta * (n_a * m_b / (n_a + m_b)))
            sum_scr[...] = sum_scr[...] + s_b

        @pl.when(yy == pl.num_programs(1) - 1)
        def _():
            psum_ref[0] = jnp.broadcast_to(sum_scr[...], (8, c_out_pad))
            pm2_ref[0] = jnp.broadcast_to(m2_scr[...], (8, c_out_pad))

    return kernel


# ----------------------------------------------------------------------------
# Pass 2: folded BN scale/shift + ReLU on large flat lane-dense tiles.
# ----------------------------------------------------------------------------
def _bn_relu_kernel(y_ref, scale_ref, shift_ref, o_ref):
    y = y_ref[...].astype(jnp.float32)                  # (TR, Cp)
    o_ref[...] = jnp.maximum(y * scale_ref[...] + shift_ref[...], 0.0)


def _pick_row_tile(h_out, w_out, target_m=256, max_m=4096):
    """Output rows per pass-1 grid step: divisor of h_out, tile-aligned M."""
    best = h_out
    for d in range(1, h_out + 1):
        if h_out % d:
            continue
        m = d * w_out
        if d != h_out and m % 16:
            continue                      # keep bf16 sublane-tile aligned blocks
        if m >= target_m or d == h_out:
            best = d
            break
    if best * w_out > max_m:
        for d in range(best - 1, 0, -1):
            if h_out % d == 0 and (d * w_out) % 16 == 0 and d * w_out <= max_m:
                return d
    return best


def _pick_flat_tile(total_rows, cap=2048):
    cap = min(cap, total_rows)
    for multiple in (16, 8):
        for d in range(cap, 0, -1):
            if total_rows % d == 0 and d % multiple == 0:
                return d
    return total_rows                    # full extent is always a legal block


# ----------------------------------------------------------------------------
# Wrapper
# ----------------------------------------------------------------------------
@functools.partial(jax.jit,
                   static_argnames=("stride", "padding", "dilation",
                                    "is_batchnorm"))
def conv2d_batchnorm_relu(x_nchw, weight, bias, gamma, beta,
                          stride=1, padding=1, dilation=1, is_batchnorm=True):
    """Forward pass of conv2DBatchNormRelu.

    x_nchw : (N, C_in, H, W)      weight : (C_out, C_in, KH, KW)
    bias / gamma / beta : (C_out,)
    returns (N, C_out, H_out, W_out) float32 (NCHW, as the PyTorch module).
    """
    n, c_in, h, w = x_nchw.shape
    c_out, _, kh, kw = weight.shape
    h_out = (h + 2 * padding - dilation * (kh - 1) - 1) // stride + 1
    w_out = (w + 2 * padding - dilation * (kw - 1) - 1) // stride + 1
    hp, wp = h + 2 * padding, w + 2 * padding
    cp = ((c_out + 127) // 128) * 128        # lane-dense padded C_out
    # NOTE: for tiny C_out most of cp is zero padding; packing (W_out, C_out)
    # onto the lane axis would cut output HBM bytes further but needs a
    # different GEMM layout -- not done here.

    th = _pick_row_tile(h_out, w_out)        # output rows per pass-1 grid step
    tile_m = th * w_out                      # GEMM M per grid step

    # -------- layout + tap folding (XLA-side, cheap, done once) --------------
    x_nhwc = jnp.transpose(x_nchw, (0, 2, 3, 1)).astype(jnp.bfloat16)
    xp = jnp.pad(x_nhwc, ((0, 0), (padding, padding), (padding, padding), (0, 0)))

    w_t = jnp.transpose(weight, (2, 3, 1, 0)).astype(jnp.float32)  # (kh,kw,ci,co)
    w_t = jnp.pad(w_t, ((0, 0), (0, 0), (0, 0), (0, cp - c_out)))

    if stride == 1:
        # Fold KW taps into the contraction dim in the wrapper (kw x a small
        # input); KH taps are folded in-kernel from a single resident image
        # slab, so the padded input is DMA'd exactly once per image.
        k_dim = kw * c_in
        cols = [lax.slice_in_dim(xp, j * dilation, j * dilation + w_out, axis=2)
                for j in range(kw)]
        x_fold = jnp.concatenate(cols, axis=-1)            # (n, hp, w_out, K)
        x_fold = x_fold.reshape(n, hp * w_out, k_dim)
        w_fold = w_t.reshape(kh, kw * c_in, cp).astype(jnp.bfloat16)
        tap_offsets = tuple(i * dilation * w_out for i in range(kh))
        x_spec = pl.BlockSpec((1, hp * w_out, k_dim), lambda nn, yy: (nn, 0, 0))
    else:
        # General stride: full im2col fold in the wrapper, one matmul per tile.
        # TODO(synk): a halo-tiled in-kernel patch build would avoid the kh*kw
        # input expansion for strided convs with large C_in.
        k_dim = kh * kw * c_in
        patches = []
        for i in range(kh):
            r_lim = i * dilation + (h_out - 1) * stride + 1
            rows = lax.slice_in_dim(xp, i * dilation, r_lim, stride=stride, axis=1)
            for j in range(kw):
                c_lim = j * dilation + (w_out - 1) * stride + 1
                patches.append(
                    lax.slice_in_dim(rows, j * dilation, c_lim, stride=stride, axis=2))
        x_fold = jnp.concatenate(patches, axis=-1)         # (n, h_out, w_out, K)
        x_fold = x_fold.reshape(n, h_out * w_out, k_dim)
        w_fold = w_t.reshape(1, k_dim, cp).astype(jnp.bfloat16)
        tap_offsets = None
        x_spec = pl.BlockSpec((1, tile_m, k_dim), lambda nn, yy: (nn, yy, 0))

    w_spec = pl.BlockSpec(w_fold.shape, lambda nn, yy: (0, 0, 0))

    # -------- Pass 1: conv tiles + per-image BN partial stats ----------------
    kernel1 = _make_conv_stats_kernel(tile_m, cp, tap_offsets, tile_m)
    y_conv, psum, pm2 = pl.pallas_call(
        kernel1,
        grid_spec=pltpu.PrefetchScalarGridSpec(
            num_scalar_prefetch=0,
            grid=(n, h_out // th),
            in_specs=[x_spec, w_spec],
            out_specs=(
                pl.BlockSpec((1, tile_m, cp), lambda nn, yy: (nn, yy, 0)),
                pl.BlockSpec((1, 8, cp), lambda nn, yy: (nn, 0, 0)),
                pl.BlockSpec((1, 8, cp), lambda nn, yy: (nn, 0, 0)),
            ),
            scratch_shapes=[pltpu.VMEM((1, cp), jnp.float32),
                            pltpu.VMEM((1, cp), jnp.float32)],
        ),
        out_shape=(
            jax.ShapeDtypeStruct((n, h_out * w_out, cp), jnp.bfloat16),
            jax.ShapeDtypeStruct((n, 8, cp), jnp.float32),
            jax.ShapeDtypeStruct((n, 8, cp), jnp.float32),
        ),
        compiler_params=pltpu.CompilerParams(
            dimension_semantics=("parallel", "arbitrary")),
    )(x_fold, w_fold)

    # -------- tiny XLA reduction: merge per-image stats -> scale/shift -------
    gamma_p = jnp.pad(gamma.astype(jnp.float32), (0, cp - c_out))
    beta_p = jnp.pad(beta.astype(jnp.float32), (0, cp - c_out))
    if is_batchnorm:
        # Conv bias is exactly cancelled by the batch-stat mean subtraction.
        m_img = float(h_out * w_out)
        m_tot = float(n * h_out * w_out)
        sums = psum[:, 0, :]                               # (n, Cp)
        m2s = pm2[:, 0, :]                                 # (n, Cp)
        mean = jnp.sum(sums, axis=0) / m_tot               # (Cp,)
        mean_img = sums / m_img
        m2 = jnp.sum(m2s, axis=0) + m_img * jnp.sum((mean_img - mean) ** 2, axis=0)
        var = jnp.maximum(m2 / m_tot, 0.0)                 # biased, as in torch
        inv_std = lax.rsqrt(var + 1e-5)
        scale = (gamma_p * inv_std).reshape(1, cp)
        shift = (beta_p - mean * gamma_p * inv_std).reshape(1, cp)
    else:
        scale = jnp.ones((1, cp), jnp.float32)
        shift = jnp.pad(bias.astype(jnp.float32), (0, cp - c_out)).reshape(1, cp)

    # -------- Pass 2: folded BN FMA + ReLU on large flat tiles ---------------
    total_rows = n * h_out * w_out
    tr = _pick_flat_tile(total_rows)
    out_flat = pl.pallas_call(
        _bn_relu_kernel,
        grid=(total_rows // tr,),
        in_specs=[
            pl.BlockSpec((tr, cp), lambda t: (t, 0)),
            pl.BlockSpec((1, cp), lambda t: (0, 0)),
            pl.BlockSpec((1, cp), lambda t: (0, 0)),
        ],
        out_specs=pl.BlockSpec((tr, cp), lambda t: (t, 0)),
        out_shape=jax.ShapeDtypeStruct((total_rows, cp), jnp.float32),
        compiler_params=pltpu.CompilerParams(dimension_semantics=("parallel",)),
    )(y_conv.reshape(total_rows, cp), scale, shift)

    # Layout glue (XLA): drop channel padding and return NCHW to match the
    # PyTorch module.  A production pipeline would keep NHWC (or fuse pass 2
    # into the consumer) and skip this extra read+write of the output.
    out_nhwc = out_flat.reshape(n, h_out, w_out, cp)[..., :c_out]
    return jnp.transpose(out_nhwc, (0, 3, 1, 2))


# ----------------------------------------------------------------------------
# Pure-JAX reference (for sanity check)
# ----------------------------------------------------------------------------
def _reference(x_nchw, weight, bias, gamma, beta, stride, padding, dilation):
    y = lax.conv_general_dilated(
        x_nchw.astype(jnp.float32), weight.astype(jnp.float32),
        window_strides=(stride, stride),
        padding=((padding, padding), (padding, padding)),
        rhs_dilation=(dilation, dilation),
        dimension_numbers=("NCHW", "OIHW", "NCHW"),
    ) + bias.reshape(1, -1, 1, 1)
    mean = jnp.mean(y, axis=(0, 2, 3), keepdims=True)
    var = jnp.mean((y - mean) ** 2, axis=(0, 2, 3), keepdims=True)
    y = (y - mean) / jnp.sqrt(var + 1e-5)
    y = y * gamma.reshape(1, -1, 1, 1) + beta.reshape(1, -1, 1, 1)
    return jnp.maximum(y, 0.0)


if __name__ == "__main__":
    # Module config: in_channels=4, n_filters=8, k_size=3, stride=1, padding=1,
    # bias=True, dilation=1, is_batchnorm=True.
    N, C_IN, H, W = 2, 4, 16, 16
    C_OUT, K = 8, 3
    STRIDE, PAD, DIL = 1, 1, 1

    key = jax.random.PRNGKey(0)
    kx, kw_, kb = jax.random.split(key, 3)

    x = jax.random.normal(kx, (N, C_IN, H, W), dtype=jnp.float32)
    fan_in = C_IN * K * K
    weight = jax.random.normal(kw_, (C_OUT, C_IN, K, K), dtype=jnp.float32) / jnp.sqrt(fan_in)
    bias = jax.random.normal(kb, (C_OUT,), dtype=jnp.float32) * 0.1
    gamma = jnp.ones((C_OUT,), dtype=jnp.float32)   # BatchNorm2d default weight
    beta = jnp.zeros((C_OUT,), dtype=jnp.float32)   # BatchNorm2d default bias

    out = conv2d_batchnorm_relu(x, weight, bias, gamma, beta,
                                stride=STRIDE, padding=PAD, dilation=DIL)
    out = jax.block_until_ready(out)
    assert out.shape == (N, C_OUT, H, W), out.shape

    # Reference with the same bf16 rounding of the matmul inputs; the kernel's
    # only additional rounding is the bf16 conv intermediate, covered by the
    # tolerance below.
    x_r = x.astype(jnp.bfloat16).astype(jnp.float32)
    w_r = weight.astype(jnp.bfloat16).astype(jnp.float32)
    ref = _reference(x_r, w_r, bias, gamma, beta, STRIDE, PAD, DIL)
    assert jnp.allclose(out, ref, atol=3e-2, rtol=3e-2), (
        "mismatch vs reference, max abs err = %f"
        % float(jnp.max(jnp.abs(out - ref))))

    print("KERNEL_OK")
</pallas_src>

<mosaic_0001>
module attributes {stable_mosaic.version = 11 : i64} {
  func.func @kernel(%arg0: i32, %arg1: i32, %arg2: memref<1x288x12xbf16, #tpu.memory_space<vmem>>, %arg3: memref<3x12x128xbf16, #tpu.memory_space<vmem>>, %arg4: memref<1x256x128xbf16, #tpu.memory_space<vmem>>, %arg5: memref<1x8x128xf32, #tpu.memory_space<vmem>>, %arg6: memref<1x8x128xf32, #tpu.memory_space<vmem>>, %arg7: memref<1x128xf32, #tpu.memory_space<vmem>>, %arg8: memref<1x128xf32, #tpu.memory_space<vmem>>) attributes {dimension_semantics = [#tpu.dimension_semantics<parallel>, #tpu.dimension_semantics<arbitrary>], iteration_bounds = array<i64: 2, 1>, scalar_prefetch = 0 : i64, scratch_operands = 2 : i64, tpu.core_type = #tpu.core_type<tc>, window_params = [{transform_indices = @transform_0, window_bounds = array<i64: 1, 288, 12>}, {pipeline_mode = #tpu.pipeline_mode<synchronous>, transform_indices = @transform_1, window_bounds = array<i64: 3, 12, 128>}, {transform_indices = @transform_2, window_bounds = array<i64: 1, 256, 128>}, {transform_indices = @transform_3, window_bounds = array<i64: 1, 8, 128>}, {transform_indices = @transform_4, window_bounds = array<i64: 1, 8, 128>}]} {
    %c256_i32 = arith.constant 256 : i32
    %0 = arith.muli %arg1, %c256_i32 : i32
    %cst = arith.constant 0.000000e+00 : f32
    %1 = vector.broadcast %cst : f32 to vector<256x128xf32>
    %c0_i32 = arith.constant 0 : i32
    %2 = arith.addi %0, %c0_i32 : i32
    %c0 = arith.constant 0 : index
    %3 = arith.index_cast %2 : i32 to index
    %c0_0 = arith.constant 0 : index
    %4 = vector.load %arg2[%c0, %3, %c0_0] : memref<1x288x12xbf16, #tpu.memory_space<vmem>>, vector<1x256x12xbf16>
    %5 = vector.shape_cast %4 : vector<1x256x12xbf16> to vector<256x12xbf16>
    %c0_1 = arith.constant 0 : index
    %c0_2 = arith.constant 0 : index
    %c0_3 = arith.constant 0 : index
    %6 = vector.load %arg3[%c0_1, %c0_2, %c0_3] : memref<3x12x128xbf16, #tpu.memory_space<vmem>>, vector<1x12x128xbf16>
    %7 = vector.shape_cast %6 : vector<1x12x128xbf16> to vector<12x128xbf16>
    %cst_4 = arith.constant dense<0.000000e+00> : vector<256x128xf32>
    %8 = tpu.matmul %5, %7, %cst_4 {dimension_numbers = #tpu.dot_dimension_numbers<[1], [0], [0], [1], [0, 0, 1, 1], [], []>} : vector<256x12xbf16>, vector<12x128xbf16>, vector<256x128xf32> -> vector<256x128xf32>
    %9 = arith.addf %1, %8 : vector<256x128xf32>
    %c16_i32 = arith.constant 16 : i32
    %10 = arith.addi %0, %c16_i32 : i32
    %c0_5 = arith.constant 0 : index
    %11 = arith.index_cast %10 : i32 to index
    %c0_6 = arith.constant 0 : index
    %12 = vector.load %arg2[%c0_5, %11, %c0_6] : memref<1x288x12xbf16, #tpu.memory_space<vmem>>, vector<1x256x12xbf16>
    %13 = vector.shape_cast %12 : vector<1x256x12xbf16> to vector<256x12xbf16>
    %c1 = arith.constant 1 : index
    %c0_7 = arith.constant 0 : index
    %c0_8 = arith.constant 0 : index
    %14 = vector.load %arg3[%c1, %c0_7, %c0_8] : memref<3x12x128xbf16, #tpu.memory_space<vmem>>, vector<1x12x128xbf16>
    %15 = vector.shape_cast %14 : vector<1x12x128xbf16> to vector<12x128xbf16>
    %cst_9 = arith.constant dense<0.000000e+00> : vector<256x128xf32>
    %16 = tpu.matmul %13, %15, %cst_9 {dimension_numbers = #tpu.dot_dimension_numbers<[1], [0], [0], [1], [0, 0, 1, 1], [], []>} : vector<256x12xbf16>, vector<12x128xbf16>, vector<256x128xf32> -> vector<256x128xf32>
    %17 = arith.addf %9, %16 : vector<256x128xf32>
    %c32_i32 = arith.constant 32 : i32
    %18 = arith.addi %0, %c32_i32 : i32
    %c0_10 = arith.constant 0 : index
    %19 = arith.index_cast %18 : i32 to index
    %c0_11 = arith.constant 0 : index
    %20 = vector.load %arg2[%c0_10, %19, %c0_11] : memref<1x288x12xbf16, #tpu.memory_space<vmem>>, vector<1x256x12xbf16>
    %21 = vector.shape_cast %20 : vector<1x256x12xbf16> to vector<256x12xbf16>
    %c2 = arith.constant 2 : index
    %c0_12 = arith.constant 0 : index
    %c0_13 = arith.constant 0 : index
    %22 = vector.load %arg3[%c2, %c0_12, %c0_13] : memref<3x12x128xbf16, #tpu.memory_space<vmem>>, vector<1x12x128xbf16>
    %23 = vector.shape_cast %22 : vector<1x12x128xbf16> to vector<12x128xbf16>
    %cst_14 = arith.constant dense<0.000000e+00> : vector<256x128xf32>
    %24 = tpu.matmul %21, %23, %cst_14 {dimension_numbers = #tpu.dot_dimension_numbers<[1], [0], [0], [1], [0, 0, 1, 1], [], []>} : vector<256x12xbf16>, vector<12x128xbf16>, vector<256x128xf32> -> vector<256x128xf32>
    %25 = arith.addf %17, %24 : vector<256x128xf32>
    %26 = arith.truncf %25 : vector<256x128xf32> to vector<256x128xbf16>
    %c0_15 = arith.constant 0 : index
    %c0_16 = arith.constant 0 : index
    %c0_17 = arith.constant 0 : index
    %27 = vector.load %arg4[%c0_15, %c0_16, %c0_17] : memref<1x256x128xbf16, #tpu.memory_space<vmem>>, vector<1x256x128xbf16>
    %28 = vector.shape_cast %27 : vector<1x256x128xbf16> to vector<256x128xbf16>
    %29 = vector.shape_cast %26 : vector<256x128xbf16> to vector<1x256x128xbf16>
    tpu.vector_store %arg4[%c0_15, %c0_16, %c0_17], %29 {strides = array<i32>} : memref<1x256x128xbf16, #tpu.memory_space<vmem>>, vector<1x256x128xbf16>,
    %cst_18 = arith.constant dense<0.000000e+00> : vector<128xf32>
    %30 = vector.multi_reduction <add>, %25, %cst_18 [0] : vector<256x128xf32> to vector<128xf32>
    %31 = vector.shape_cast %30 : vector<128xf32> to vector<1x128xf32>
    %cst_19 = arith.constant 3.906250e-03 : f32
    %32 = vector.broadcast %cst_19 : f32 to vector<1x128xf32>
    %33 = arith.mulf %31, %32 : vector<1x128xf32>
    %34 = vector.broadcast %33 : vector<1x128xf32> to vector<256x128xf32>
    %35 = arith.subf %25, %34 : vector<256x128xf32>
    %36 = arith.mulf %35, %35 : vector<256x128xf32>
    %cst_20 = arith.constant dense<0.000000e+00> : vector<128xf32>
    %37 = vector.multi_reduction <add>, %36, %cst_20 [0] : vector<256x128xf32> to vector<128xf32>
    %38 = vector.shape_cast %37 : vector<128xf32> to vector<1x128xf32>
    %c0_i32_21 = arith.constant 0 : i32
    %39 = arith.cmpi eq, %arg1, %c0_i32_21 : i32
    %40 = arith.extui %39 : i1 to i32
    %c0_i32_22 = arith.constant 0 : i32
    %41 = arith.cmpi ne, %40, %c0_i32_22 : i32
    scf.if %41 {
      %c0_27 = arith.constant 0 : index
      %c0_28 = arith.constant 0 : index
      %48 = vector.load %arg7[%c0_27, %c0_28] : memref<1x128xf32, #tpu.memory_space<vmem>>, vector<1x128xf32>
      tpu.vector_store %arg7[%c0_27, %c0_28], %31 {strides = array<i32>} : memref<1x128xf32, #tpu.memory_space<vmem>>, vector<1x128xf32>,
      %c0_29 = arith.constant 0 : index
      %c0_30 = arith.constant 0 : index
      %49 = vector.load %arg8[%c0_29, %c0_30] : memref<1x128xf32, #tpu.memory_space<vmem>>, vector<1x128xf32>
      tpu.vector_store %arg8[%c0_29, %c0_30], %38 {strides = array<i32>} : memref<1x128xf32, #tpu.memory_space<vmem>>, vector<1x128xf32>,
    } else {
    }
    %c0_i32_23 = arith.constant 0 : i32
    %42 = arith.cmpi sgt, %arg1, %c0_i32_23 : i32
    %43 = arith.extui %42 : i1 to i32
    %c0_i32_24 = arith.constant 0 : i32
    %44 = arith.cmpi ne, %43, %c0_i32_24 : i32
    scf.if %44 {
      %48 = arith.sitofp %arg1 : i32 to f32
      %cst_27 = arith.constant 2.560000e+02 : f32
      %49 = arith.mulf %48, %cst_27 : f32
      %c0_28 = arith.constant 0 : index
      %c0_29 = arith.constant 0 : index
      %50 = vector.load %arg7[%c0_28, %c0_29] : memref<1x128xf32, #tpu.memory_space<vmem>>, vector<1x128xf32>
      %51 = vector.broadcast %49 : f32 to vector<1x128xf32>
      %52 = arith.divf %50, %51 : vector<1x128xf32>
      %53 = arith.subf %33, %52 : vector<1x128xf32>
      %c0_30 = arith.constant 0 : index
      %c0_31 = arith.constant 0 : index
      %54 = vector.load %arg8[%c0_30, %c0_31] : memref<1x128xf32, #tpu.memory_space<vmem>>, vector<1x128xf32>
      %55 = arith.addf %54, %38 : vector<1x128xf32>
      %56 = arith.mulf %53, %53 : vector<1x128xf32>
      %cst_32 = arith.constant 2.560000e+02 : f32
      %57 = arith.mulf %49, %cst_32 : f32
      %cst_33 = arith.constant 2.560000e+02 : f32
      %58 = arith.addf %49, %cst_33 : f32
      %59 = arith.divf %57, %58 : f32
      %60 = vector.broadcast %59 : f32 to vector<1x128xf32>
      %61 = arith.mulf %56, %60 : vector<1x128xf32>
      %62 = arith.addf %55, %61 : vector<1x128xf32>
      %c0_34 = arith.constant 0 : index
      %c0_35 = arith.constant 0 : index
      %63 = vector.load %arg8[%c0_34, %c0_35] : memref<1x128xf32, #tpu.memory_space<vmem>>, vector<1x128xf32>
      tpu.vector_store %arg8[%c0_34, %c0_35], %62 {strides = array<i32>} : memref<1x128xf32, #tpu.memory_space<vmem>>, vector<1x128xf32>,
      %c0_36 = arith.constant 0 : index
      %c0_37 = arith.constant 0 : index
      %64 = vector.load %arg7[%c0_36, %c0_37] : memref<1x128xf32, #tpu.memory_space<vmem>>, vector<1x128xf32>
      %65 = arith.addf %64, %31 : vector<1x128xf32>
      %c0_38 = arith.constant 0 : index
      %c0_39 = arith.constant 0 : index
      %66 = vector.load %arg7[%c0_38, %c0_39] : memref<1x128xf32, #tpu.memory_space<vmem>>, vector<1x128xf32>
      tpu.vector_store %arg7[%c0_38, %c0_39], %65 {strides = array<i32>} : memref<1x128xf32, #tpu.memory_space<vmem>>, vector<1x128xf32>,
    } else {
    }
    %c0_i32_25 = arith.constant 0 : i32
    %45 = arith.cmpi eq, %arg1, %c0_i32_25 : i32
    %46 = arith.extui %45 : i1 to i32
    %c0_i32_26 = arith.constant 0 : i32
    %47 = arith.cmpi ne, %46, %c0_i32_26 : i32
    scf.if %47 {
      %c0_27 = arith.constant 0 : index
      %c0_28 = arith.constant 0 : index
      %48 = vector.load %arg7[%c0_27, %c0_28] : memref<1x128xf32, #tpu.memory_space<vmem>>, vector<1x128xf32>
      %49 = vector.shape_cast %48 : vector<1x128xf32> to vector<1x128xf32>
      %50 = vector.broadcast %49 : vector<1x128xf32> to vector<8x128xf32>
      %c0_29 = arith.constant 0 : index
      %c0_30 = arith.constant 0 : index
      %c0_31 = arith.constant 0 : index
      %51 = vector.load %arg5[%c0_29, %c0_30, %c0_31] : memref<1x8x128xf32, #tpu.memory_space<vmem>>, vector<1x8x128xf32>
      %52 = vector.shape_cast %51 : vector<1x8x128xf32> to vector<8x128xf32>
      %53 = vector.shape_cast %50 : vector<8x128xf32> to vector<1x8x128xf32>
      tpu.vector_store %arg5[%c0_29, %c0_30, %c0_31], %53 {strides = array<i32>} : memref<1x8x128xf32, #tpu.memory_space<vmem>>, vector<1x8x128xf32>,
      %c0_32 = arith.constant 0 : index
      %c0_33 = arith.constant 0 : index
      %54 = vector.load %arg8[%c0_32, %c0_33] : memref<1x128xf32, #tpu.memory_space<vmem>>, vector<1x128xf32>
      %55 = vector.shape_cast %54 : vector<1x128xf32> to vector<1x128xf32>
      %56 = vector.broadcast %55 : vector<1x128xf32> to vector<8x128xf32>
      %c0_34 = arith.constant 0 : index
      %c0_35 = arith.constant 0 : index
      %c0_36 = arith.constant 0 : index
      %57 = vector.load %arg6[%c0_34, %c0_35, %c0_36] : memref<1x8x128xf32, #tpu.memory_space<vmem>>, vector<1x8x128xf32>
      %58 = vector.shape_cast %57 : vector<1x8x128xf32> to vector<8x128xf32>
      %59 = vector.shape_cast %56 : vector<8x128xf32> to vector<1x8x128xf32>
      tpu.vector_store %arg6[%c0_34, %c0_35, %c0_36], %59 {strides = array<i32>} : memref<1x8x128xf32, #tpu.memory_space<vmem>>, vector<1x8x128xf32>,
    } else {
    }
    return
  }
  func.func @transform_0(%arg0: i32, %arg1: i32) -> (i32, i32, i32) {
    %c0_i32 = arith.constant 0 : i32
    %c0_i32_0 = arith.constant 0 : i32
    %c0_i32_1 = arith.constant 0 : i32
    return %arg0, %c0_i32, %c0_i32_0 : i32, i32, i32
  }
  func.func @transform_1(%arg0: i32, %arg1: i32) -> (i32, i32, i32) {
    %c0_i32 = arith.constant 0 : i32
    %c0_i32_0 = arith.constant 0 : i32
    %c0_i32_1 = arith.constant 0 : i32
    %c0_i32_2 = arith.constant 0 : i32
    return %c0_i32, %c0_i32_0, %c0_i32_1 : i32, i32, i32
  }
  func.func @transform_2(%arg0: i32, %arg1: i32) -> (i32, i32, i32) {
    %c0_i32 = arith.constant 0 : i32
    %c0_i32_0 = arith.constant 0 : i32
    return %arg0, %arg1, %c0_i32 : i32, i32, i32
  }
  func.func @transform_3(%arg0: i32, %arg1: i32) -> (i32, i32, i32) {
    %c0_i32 = arith.constant 0 : i32
    %c0_i32_0 = arith.constant 0 : i32
    %c0_i32_1 = arith.constant 0 : i32
    return %arg0, %c0_i32, %c0_i32_0 : i32, i32, i32
  }
  func.func @transform_4(%arg0: i32, %arg1: i32) -> (i32, i32, i32) {
    %c0_i32 = arith.constant 0 : i32
    %c0_i32_0 = arith.constant 0 : i32
    %c0_i32_1 = arith.constant 0 : i32
    return %arg0, %c0_i32, %c0_i32_0 : i32, i32, i32
  }
}

module attributes {stable_mosaic.version = 11 : i64} {
  func.func @_bn_relu_kernel(%arg0: i32, %arg1: memref<512x128xbf16, #tpu.memory_space<vmem>>, %arg2: memref<1x128xf32, #tpu.memory_space<vmem>>, %arg3: memref<1x128xf32, #tpu.memory_space<vmem>>, %arg4: memref<512x128xf32, #tpu.memory_space<vmem>>) attributes {dimension_semantics = [#tpu.dimension_semantics<parallel>], iteration_bounds = array<i64: 1>, scalar_prefetch = 0 : i64, scratch_operands = 0 : i64, tpu.core_type = #tpu.core_type<tc>, window_params = [{transform_indices = @transform_0, window_bounds = array<i64: 512, 128>}, {pipeline_mode = #tpu.pipeline_mode<synchronous>, transform_indices = @transform_1, window_bounds = array<i64: 1, 128>}, {pipeline_mode = #tpu.pipeline_mode<synchronous>, transform_indices = @transform_2, window_bounds = array<i64: 1, 128>}, {transform_indices = @transform_3, window_bounds = array<i64: 512, 128>}]} {
    %c0 = arith.constant 0 : index
    %c0_0 = arith.constant 0 : index
    %0 = vector.load %arg1[%c0, %c0_0] : memref<512x128xbf16, #tpu.memory_space<vmem>>, vector<512x128xbf16>
    %1 = arith.extf %0 : vector<512x128xbf16> to vector<512x128xf32>
    %c0_1 = arith.constant 0 : index
    %c0_2 = arith.constant 0 : index
    %2 = vector.load %arg2[%c0_1, %c0_2] : memref<1x128xf32, #tpu.memory_space<vmem>>, vector<1x128xf32>
    %3 = vector.broadcast %2 : vector<1x128xf32> to vector<512x128xf32>
    %4 = arith.mulf %1, %3 : vector<512x128xf32>
    %c0_3 = arith.constant 0 : index
    %c0_4 = arith.constant 0 : index
    %5 = vector.load %arg3[%c0_3, %c0_4] : memref<1x128xf32, #tpu.memory_space<vmem>>, vector<1x128xf32>
    %6 = vector.broadcast %5 : vector<1x128xf32> to vector<512x128xf32>
    %7 = arith.addf %4, %6 : vector<512x128xf32>
    %cst = arith.constant 0.000000e+00 : f32
    %8 = vector.broadcast %cst : f32 to vector<512x128xf32>
    %9 = arith.maximumf %7, %8 : vector<512x128xf32>
    %c0_5 = arith.constant 0 : index
    %c0_6 = arith.constant 0 : index
    %10 = vector.load %arg4[%c0_5, %c0_6] : memref<512x128xf32, #tpu.memory_space<vmem>>, vector<512x128xf32>
    tpu.vector_store %arg4[%c0_5, %c0_6], %9 {strides = array<i32>} : memref<512x128xf32, #tpu.memory_space<vmem>>, vector<512x128xf32>,
    return
  }
  func.func @transform_0(%arg0: i32) -> (i32, i32) {
    %c0_i32 = arith.constant 0 : i32
    %c0_i32_0 = arith.constant 0 : i32
    return %arg0, %c0_i32 : i32, i32
  }
  func.func @transform_1(%arg0: i32) -> (i32, i32) {
    %c0_i32 = arith.constant 0 : i32
    %c0_i32_0 = arith.constant 0 : i32
    %c0_i32_1 = arith.constant 0 : i32
    return %c0_i32, %c0_i32_0 : i32, i32
  }
  func.func @transform_2(%arg0: i32) -> (i32, i32) {
    %c0_i32 = arith.constant 0 : i32
    %c0_i32_0 = arith.constant 0 : i32
    %c0_i32_1 = arith.constant 0 : i32
    return %c0_i32, %c0_i32_0 : i32, i32
  }
  func.func @transform_3(%arg0: i32) -> (i32, i32) {
    %c0_i32 = arith.constant 0 : i32
    %c0_i32_0 = arith.constant 0 : i32
    return %arg0, %c0_i32 : i32, i32
  }
}

</mosaic_0001>

<bundles_post_ra>
// kernel: conv2d_batchnorm_relu.3
= control target key start
LH: loop header
LB: loop body
LE: loop exit
PB: predicated region body
PF: predicated region fallthrough
CT: control target
= control target key end

     0   :  { %s1023_s0 = inlined_call_operand.vmem [shape: bf16[512,128], index: 0, kind: input, shape index: {}]   ;;  %s1024_s1 = inlined_call_operand.vmem [shape: f32[1,128], index: 1, kind: input, shape index: {}]   ;;  %s1025_s2 = inlined_call_operand.vmem [shape: f32[1,128], index: 2, kind: input, shape index: {}]   ;;  %s1026_s3 = inlined_call_operand.vmem [shape: f32[512,128], index: 3, kind: output, shape index: {}]  }
   0x1   :  { %v419_v0 = vld [vmem:[%s1023_s0] sm:$0xff]   ;;  %v546_v4 = vld [vmem:[%s1023_s0 + $0x8] sm:$0xff]   ;;  %v547_v5 = vld [vmem:[%s1023_s0 + $0x10] sm:$0xff]  }
   0x2   :  { %v603_v1 = vld [vmem:[%s1024_s1] ss:$0 sm:$0xff]  ;;  %v420_v2 = vunpack.c.l.bf16 %v419_v0  ;;  %v421_v3 = vunpack.c.h.bf16 %v419_v0  ;;  %v548_v6 = vld [vmem:[%s1023_s0 + $0x18] sm:$0xff]   ;;  %v424_v8 = vunpack.c.l.bf16 %v546_v4  ;;  %v425_v9 = vunpack.c.h.bf16 %v546_v4  ;;  %v550_v33 = vld [vmem:[%s1023_s0 + $0x28] sm:$0xff]  }
   0x3   :  { %v617_v7 = vld [vmem:[%s1025_s2] ss:$0 sm:$0xff]  ;;  %v428_v10 = vunpack.c.l.bf16 %v547_v5  ;;  %v429_v11 = vunpack.c.h.bf16 %v547_v5  ;;  %v432_v14 = vunpack.c.l.bf16 %v548_v6  ;;  %v433_v15 = vunpack.c.h.bf16 %v548_v6  ;;  %v551_v34 = vld [vmem:[%s1023_s0 + $0x30] sm:$0xff]   ;;  %v552_v39 = vld [vmem:[%s1023_s0 + $0x38] sm:$0xff]  }
   0x4   :  { %v149_v12 = vmul.f32 %v420_v2, %v603_v1  ;;  %v150_v13 = vmul.f32 %v421_v3, %v603_v1  ;;  %v151_v16 = vmul.f32 %v424_v8, %v603_v1  ;;  %v152_v17 = vmul.f32 %v425_v9, %v603_v1  ;;  %v549_v28 = vld [vmem:[%s1023_s0 + $0x20] sm:$0xff]   ;;  %v554_v6 = vld [vmem:[%s1023_s0 + $0x48] sm:$0xff]   ;;  %v555_v8 = vld [vmem:[%s1023_s0 + $0x50] sm:$0xff]  }
   0x5   :  { %v153_v18 = vmul.f32 %v428_v10, %v603_v1  ;;  %v154_v19 = vmul.f32 %v429_v11, %v603_v1  ;;  %v155_v22 = vmul.f32 %v432_v14, %v603_v1  ;;  %v156_v23 = vmul.f32 %v433_v15, %v603_v1  ;;  %v553_v0 = vld [vmem:[%s1023_s0 + $0x40] sm:$0xff]  }
   0x6   :  { %v220_v20 = vadd.f32 %v617_v7, %v149_v12  ;;  %v221_v21 = vadd.f32 %v617_v7, %v150_v13  ;;  %v222_v24 = vadd.f32 %v617_v7, %v151_v16  ;;  %v223_v25 = vadd.f32 %v617_v7, %v152_v17  ;;  %v556_v13 = vld [vmem:[%s1023_s0 + $0x58] sm:$0xff]  }
   0x7   :  { %v224_v26 = vadd.f32 %v617_v7, %v153_v18  ;;  %v225_v27 = vadd.f32 %v617_v7, %v154_v19  ;;  %v226_v31 = vadd.f32 %v617_v7, %v155_v22  ;;  %v227_v32 = vadd.f32 %v617_v7, %v156_v23 }
   0x8   :  { %v284_v29 = vmax.f32 %v220_v20, 0.0  ;;  %v285_v30 = vmax.f32 %v221_v21, 0.0  ;;  %v286_v35 = vmax.f32 %v222_v24, 0.0  ;;  %v287_v36 = vmax.f32 %v223_v25, 0.0 }
   0x9   :  { %v288_v37 = vmax.f32 %v224_v26, 0.0  ;;  %v289_v38 = vmax.f32 %v225_v27, 0.0  ;;  %v290_v40 = vmax.f32 %v226_v31, 0.0  ;;  %v291_v41 = vmax.f32 %v227_v32, 0.0 }
   0xa   :  { %348 = vst [vmem:[%s1026_s3] sm:$0xff] %v284_v29  ;;  %349 = vst [vmem:[%s1026_s3 + $0x8] sm:$0xff] %v285_v30  ;;  %v436_v42 = vunpack.c.l.bf16 %v549_v28  ;;  %v437_v43 = vunpack.c.h.bf16 %v549_v28  ;;  %v440_v44 = vunpack.c.l.bf16 %v550_v33  ;;  %v441_v45 = vunpack.c.h.bf16 %v550_v33 }
   0xb   :  { %350 = vst [vmem:[%s1026_s3 + $0x10] sm:$0xff] %v286_v35  ;;  %351 = vst [vmem:[%s1026_s3 + $0x18] sm:$0xff] %v287_v36  ;;  %v444_v46 = vunpack.c.l.bf16 %v551_v34  ;;  %v445_v47 = vunpack.c.h.bf16 %v551_v34  ;;  %v448_v50 = vunpack.c.l.bf16 %v552_v39  ;;  %v449_v51 = vunpack.c.h.bf16 %v552_v39 }
   0xc   :  { %352 = vst [vmem:[%s1026_s3 + $0x20] sm:$0xff] %v288_v37  ;;  %353 = vst [vmem:[%s1026_s3 + $0x28] sm:$0xff] %v289_v38  ;;  %v157_v48 = vmul.f32 %v436_v42, %v603_v1  ;;  %v158_v49 = vmul.f32 %v437_v43, %v603_v1  ;;  %v159_v52 = vmul.f32 %v440_v44, %v603_v1  ;;  %v452_v16 = vunpack.c.l.bf16 %v553_v0  ;;  %v557_v38 = vld [vmem:[%s1023_s0 + $0x60] sm:$0xff]   ;;  %v558_v43 = vld [vmem:[%s1023_s0 + $0x68] sm:$0xff]  }
   0xd   :  { %354 = vst [vmem:[%s1026_s3 + $0x30] sm:$0xff] %v290_v40  ;;  %355 = vst [vmem:[%s1026_s3 + $0x38] sm:$0xff] %v291_v41  ;;  %v160_v53 = vmul.f32 %v441_v45, %v603_v1  ;;  %v161_v54 = vmul.f32 %v444_v46, %v603_v1  ;;  %v162_v55 = vmul.f32 %v445_v47, %v603_v1  ;;  %v453_v17 = vunpack.c.h.bf16 %v553_v0  ;;  %v559_v44 = vld [vmem:[%s1023_s0 + $0x70] sm:$0xff]  }
   0xe   :  { %v228_v56 = vadd.f32 %v617_v7, %v157_v48  ;;  %v229_v57 = vadd.f32 %v617_v7, %v158_v49  ;;  %v163_v58 = vmul.f32 %v448_v50, %v603_v1  ;;  %v164_v59 = vmul.f32 %v449_v51, %v603_v1  ;;  %v560_v49 = vld [vmem:[%s1023_s0 + $0x78] sm:$0xff]  }
   0xf   :  { %v230_v60 = vadd.f32 %v617_v7, %v159_v52  ;;  %v231_v61 = vadd.f32 %v617_v7, %v160_v53  ;;  %v232_v62 = vadd.f32 %v617_v7, %v161_v54  ;;  %v233_v63 = vadd.f32 %v617_v7, %v162_v55 }
  0x10   :  { %v292_v2 = vmax.f32 %v228_v56, 0.0  ;;  %v293_v3 = vmax.f32 %v229_v57, 0.0  ;;  %v234_v4 = vadd.f32 %v617_v7, %v163_v58  ;;  %v235_v5 = vadd.f32 %v617_v7, %v164_v59 }
  0x11   :  { %v294_v9 = vmax.f32 %v230_v60, 0.0  ;;  %v295_v10 = vmax.f32 %v231_v61, 0.0  ;;  %v296_v11 = vmax.f32 %v232_v62, 0.0  ;;  %v297_v12 = vmax.f32 %v233_v63, 0.0 }
  0x12   :  { %356 = vst [vmem:[%s1026_s3 + $0x40] sm:$0xff] %v292_v2  ;;  %357 = vst [vmem:[%s1026_s3 + $0x48] sm:$0xff] %v293_v3  ;;  %v298_v14 = vmax.f32 %v234_v4, 0.0  ;;  %v299_v15 = vmax.f32 %v235_v5, 0.0  ;;  %v456_v18 = vunpack.c.l.bf16 %v554_v6  ;;  %v457_v19 = vunpack.c.h.bf16 %v554_v6 }
  0x13   :  { %358 = vst [vmem:[%s1026_s3 + $0x50] sm:$0xff] %v294_v9  ;;  %359 = vst [vmem:[%s1026_s3 + $0x58] sm:$0xff] %v295_v10  ;;  %v460_v20 = vunpack.c.l.bf16 %v555_v8  ;;  %v461_v21 = vunpack.c.h.bf16 %v555_v8  ;;  %v165_v22 = vmul.f32 %v452_v16, %v603_v1  ;;  %v166_v23 = vmul.f32 %v453_v17, %v603_v1  ;;  %v562_v17 = vld [vmem:[%s1023_s0 + $0x88] sm:$0xff]  }
  0x14   :  { %360 = vst [vmem:[%s1026_s3 + $0x60] sm:$0xff] %v296_v11  ;;  %361 = vst [vmem:[%s1026_s3 + $0x68] sm:$0xff] %v297_v12  ;;  %v464_v24 = vunpack.c.l.bf16 %v556_v13  ;;  %v465_v25 = vunpack.c.h.bf16 %v556_v13  ;;  %v167_v26 = vmul.f32 %v456_v18, %v603_v1  ;;  %v168_v27 = vmul.f32 %v457_v19, %v603_v1  ;;  %v561_v12 = vld [vmem:[%s1023_s0 + $0x80] sm:$0xff]   ;;  %v563_v18 = vld [vmem:[%s1023_s0 + $0x90] sm:$0xff]  }
  0x15   :  { %362 = vst [vmem:[%s1026_s3 + $0x70] sm:$0xff] %v298_v14  ;;  %363 = vst [vmem:[%s1026_s3 + $0x78] sm:$0xff] %v299_v15  ;;  %v169_v28 = vmul.f32 %v460_v20, %v603_v1  ;;  %v170_v29 = vmul.f32 %v461_v21, %v603_v1  ;;  %v236_v30 = vadd.f32 %v617_v7, %v165_v22  ;;  %v468_v52 = vunpack.c.l.bf16 %v557_v38 }
  0x16   :  { %v237_v31 = vadd.f32 %v617_v7, %v166_v23  ;;  %v171_v32 = vmul.f32 %v464_v24, %v603_v1  ;;  %v172_v33 = vmul.f32 %v465_v25, %v603_v1  ;;  %v238_v34 = vadd.f32 %v617_v7, %v167_v26  ;;  %v564_v23 = vld [vmem:[%s1023_s0 + $0x98] sm:$0xff]  }
  0x17   :  { %v239_v35 = vadd.f32 %v617_v7, %v168_v27  ;;  %v240_v36 = vadd.f32 %v617_v7, %v169_v28  ;;  %v241_v37 = vadd.f32 %v617_v7, %v170_v29  ;;  %v300_v39 = vmax.f32 %v236_v30, 0.0 }
  0x18   :  { %v301_v40 = vmax.f32 %v237_v31, 0.0  ;;  %v242_v41 = vadd.f32 %v617_v7, %v171_v32  ;;  %v243_v42 = vadd.f32 %v617_v7, %v172_v33  ;;  %v302_v45 = vmax.f32 %v238_v34, 0.0 }
  0x19   :  { %v303_v46 = vmax.f32 %v239_v35, 0.0  ;;  %v304_v47 = vmax.f32 %v240_v36, 0.0  ;;  %v305_v48 = vmax.f32 %v241_v37, 0.0  ;;  %364 = vst [vmem:[%s1026_s3 + $0x80] sm:$0xff] %v300_v39  ;;  %v469_v53 = vunpack.c.h.bf16 %v557_v38 }
  0x1a   :  { %365 = vst [vmem:[%s1026_s3 + $0x88] sm:$0xff] %v301_v40  ;;  %v306_v50 = vmax.f32 %v242_v41, 0.0  ;;  %v307_v51 = vmax.f32 %v243_v42, 0.0  ;;  %366 = vst [vmem:[%s1026_s3 + $0x90] sm:$0xff] %v302_v45  ;;  %v472_v54 = vunpack.c.l.bf16 %v558_v43  ;;  %v473_v55 = vunpack.c.h.bf16 %v558_v43 }
  0x1b   :  { %367 = vst [vmem:[%s1026_s3 + $0x98] sm:$0xff] %v303_v46  ;;  %368 = vst [vmem:[%s1026_s3 + $0xa0] sm:$0xff] %v304_v47  ;;  %v476_v56 = vunpack.c.l.bf16 %v559_v44  ;;  %v477_v57 = vunpack.c.h.bf16 %v559_v44  ;;  %v173_v58 = vmul.f32 %v468_v52, %v603_v1  ;;  %v174_v59 = vmul.f32 %v469_v53, %v603_v1  ;;  %v566_v53 = vld [vmem:[%s1023_s0 + $0xa8] sm:$0xff]  }
  0x1c   :  { %369 = vst [vmem:[%s1026_s3 + $0xa8] sm:$0xff] %v305_v48  ;;  %370 = vst [vmem:[%s1026_s3 + $0xb0] sm:$0xff] %v306_v50  ;;  %v480_v60 = vunpack.c.l.bf16 %v560_v49  ;;  %v481_v61 = vunpack.c.h.bf16 %v560_v49  ;;  %v175_v62 = vmul.f32 %v472_v54, %v603_v1  ;;  %v176_v63 = vmul.f32 %v473_v55, %v603_v1  ;;  %v565_v48 = vld [vmem:[%s1023_s0 + $0xa0] sm:$0xff]   ;;  %v567_v54 = vld [vmem:[%s1023_s0 + $0xb0] sm:$0xff]  }
  0x1d   :  { %371 = vst [vmem:[%s1026_s3 + $0xb8] sm:$0xff] %v307_v51  ;;  %v177_v0 = vmul.f32 %v476_v56, %v603_v1  ;;  %v178_v2 = vmul.f32 %v477_v57, %v603_v1  ;;  %v244_v3 = vadd.f32 %v617_v7, %v173_v58  ;;  %v245_v4 = vadd.f32 %v617_v7, %v174_v59  ;;  %v568_v59 = vld [vmem:[%s1023_s0 + $0xb8] sm:$0xff]  }
  0x1e   :  { %v179_v5 = vmul.f32 %v480_v60, %v603_v1  ;;  %v180_v6 = vmul.f32 %v481_v61, %v603_v1  ;;  %v246_v8 = vadd.f32 %v617_v7, %v175_v62  ;;  %v247_v9 = vadd.f32 %v617_v7, %v176_v63 }
  0x1f   :  { %v248_v10 = vadd.f32 %v617_v7, %v177_v0  ;;  %v249_v11 = vadd.f32 %v617_v7, %v178_v2  ;;  %v308_v13 = vmax.f32 %v244_v3, 0.0  ;;  %v309_v14 = vmax.f32 %v245_v4, 0.0 }
  0x20   :  { %v250_v15 = vadd.f32 %v617_v7, %v179_v5  ;;  %v251_v16 = vadd.f32 %v617_v7, %v180_v6  ;;  %v310_v19 = vmax.f32 %v246_v8, 0.0  ;;  %v311_v20 = vmax.f32 %v247_v9, 0.0 }
  0x21   :  { %v312_v21 = vmax.f32 %v248_v10, 0.0  ;;  %v313_v22 = vmax.f32 %v249_v11, 0.0  ;;  %372 = vst [vmem:[%s1026_s3 + $0xc0] sm:$0xff] %v308_v13  ;;  %373 = vst [vmem:[%s1026_s3 + $0xc8] sm:$0xff] %v309_v14  ;;  %v484_v26 = vunpack.c.l.bf16 %v561_v12  ;;  %v485_v27 = vunpack.c.h.bf16 %v561_v12 }
  0x22   :  { %v314_v24 = vmax.f32 %v250_v15, 0.0  ;;  %v315_v25 = vmax.f32 %v251_v16, 0.0  ;;  %374 = vst [vmem:[%s1026_s3 + $0xd0] sm:$0xff] %v310_v19  ;;  %375 = vst [vmem:[%s1026_s3 + $0xd8] sm:$0xff] %v311_v20  ;;  %v488_v28 = vunpack.c.l.bf16 %v562_v17  ;;  %v489_v29 = vunpack.c.h.bf16 %v562_v17 }
  0x23   :  { %376 = vst [vmem:[%s1026_s3 + $0xe0] sm:$0xff] %v312_v21  ;;  %377 = vst [vmem:[%s1026_s3 + $0xe8] sm:$0xff] %v313_v22  ;;  %v492_v30 = vunpack.c.l.bf16 %v563_v18  ;;  %v493_v31 = vunpack.c.h.bf16 %v563_v18  ;;  %v181_v32 = vmul.f32 %v484_v26, %v603_v1  ;;  %v182_v33 = vmul.f32 %v485_v27, %v603_v1  ;;  %v569_v22 = vld [vmem:[%s1023_s0 + $0xc0] sm:$0xff]   ;;  %v570_v27 = vld [vmem:[%s1023_s0 + $0xc8] sm:$0xff]  }
  0x24   :  { %378 = vst [vmem:[%s1026_s3 + $0xf0] sm:$0xff] %v314_v24  ;;  %379 = vst [vmem:[%s1026_s3 + $0xf8] sm:$0xff] %v315_v25  ;;  %v496_v34 = vunpack.c.l.bf16 %v564_v23  ;;  %v497_v35 = vunpack.c.h.bf16 %v564_v23  ;;  %v183_v36 = vmul.f32 %v488_v28, %v603_v1  ;;  %v184_v37 = vmul.f32 %v489_v29, %v603_v1  ;;  %v571_v28 = vld [vmem:[%s1023_s0 + $0xd0] sm:$0xff]  }
  0x25   :  { %v185_v38 = vmul.f32 %v492_v30, %v603_v1  ;;  %v186_v39 = vmul.f32 %v493_v31, %v603_v1  ;;  %v252_v40 = vadd.f32 %v617_v7, %v181_v32  ;;  %v253_v41 = vadd.f32 %v617_v7, %v182_v33  ;;  %v572_v33 = vld [vmem:[%s1023_s0 + $0xd8] sm:$0xff]  }
  0x26   :  { %v187_v42 = vmul.f32 %v496_v34, %v603_v1  ;;  %v188_v43 = vmul.f32 %v497_v35, %v603_v1  ;;  %v254_v44 = vadd.f32 %v617_v7, %v183_v36  ;;  %v255_v45 = vadd.f32 %v617_v7, %v184_v37 }
  0x27   :  { %v256_v46 = vadd.f32 %v617_v7, %v185_v38  ;;  %v257_v47 = vadd.f32 %v617_v7, %v186_v39  ;;  %v316_v49 = vmax.f32 %v252_v40, 0.0  ;;  %v317_v50 = vmax.f32 %v253_v41, 0.0 }
  0x28   :  { %v258_v51 = vadd.f32 %v617_v7, %v187_v42  ;;  %v259_v52 = vadd.f32 %v617_v7, %v188_v43  ;;  %v318_v55 = vmax.f32 %v254_v44, 0.0  ;;  %v319_v56 = vmax.f32 %v255_v45, 0.0 }
  0x29   :  { %v320_v57 = vmax.f32 %v256_v46, 0.0  ;;  %v321_v58 = vmax.f32 %v257_v47, 0.0  ;;  %380 = vst [vmem:[%s1026_s3 + $0x100] sm:$0xff] %v316_v49  ;;  %381 = vst [vmem:[%s1026_s3 + $0x108] sm:$0xff] %v317_v50  ;;  %v500_v62 = vunpack.c.l.bf16 %v565_v48  ;;  %v501_v63 = vunpack.c.h.bf16 %v565_v48 }
  0x2a   :  { %v322_v60 = vmax.f32 %v258_v51, 0.0  ;;  %v323_v61 = vmax.f32 %v259_v52, 0.0  ;;  %382 = vst [vmem:[%s1026_s3 + $0x110] sm:$0xff] %v318_v55  ;;  %383 = vst [vmem:[%s1026_s3 + $0x118] sm:$0xff] %v319_v56  ;;  %v504_v0 = vunpack.c.l.bf16 %v566_v53  ;;  %v505_v2 = vunpack.c.h.bf16 %v566_v53 }
  0x2b   :  { %384 = vst [vmem:[%s1026_s3 + $0x120] sm:$0xff] %v320_v57  ;;  %385 = vst [vmem:[%s1026_s3 + $0x128] sm:$0xff] %v321_v58  ;;  %v508_v3 = vunpack.c.l.bf16 %v567_v54  ;;  %v509_v4 = vunpack.c.h.bf16 %v567_v54  ;;  %v189_v5 = vmul.f32 %v500_v62, %v603_v1  ;;  %v190_v6 = vmul.f32 %v501_v63, %v603_v1  ;;  %v573_v58 = vld [vmem:[%s1023_s0 + $0xe0] sm:$0xff]   ;;  %v574_v63 = vld [vmem:[%s1023_s0 + $0xe8] sm:$0xff]  }
  0x2c   :  { %386 = vst [vmem:[%s1026_s3 + $0x130] sm:$0xff] %v322_v60  ;;  %387 = vst [vmem:[%s1026_s3 + $0x138] sm:$0xff] %v323_v61  ;;  %v512_v8 = vunpack.c.l.bf16 %v568_v59  ;;  %v513_v9 = vunpack.c.h.bf16 %v568_v59  ;;  %v191_v10 = vmul.f32 %v504_v0, %v603_v1  ;;  %v192_v11 = vmul.f32 %v505_v2, %v603_v1  ;;  %v575_v0 = vld [vmem:[%s1023_s0 + $0xf0] sm:$0xff]  }
  0x2d   :  { %v193_v12 = vmul.f32 %v508_v3, %v603_v1  ;;  %v194_v13 = vmul.f32 %v509_v4, %v603_v1  ;;  %v260_v14 = vadd.f32 %v617_v7, %v189_v5  ;;  %v261_v15 = vadd.f32 %v617_v7, %v190_v6  ;;  %v576_v6 = vld [vmem:[%s1023_s0 + $0xf8] sm:$0xff]  }
  0x2e   :  { %v195_v16 = vmul.f32 %v512_v8, %v603_v1  ;;  %v196_v17 = vmul.f32 %v513_v9, %v603_v1  ;;  %v262_v18 = vadd.f32 %v617_v7, %v191_v10  ;;  %v263_v19 = vadd.f32 %v617_v7, %v192_v11 }
  0x2f   :  { %v264_v20 = vadd.f32 %v617_v7, %v193_v12  ;;  %v265_v21 = vadd.f32 %v617_v7, %v194_v13  ;;  %v324_v23 = vmax.f32 %v260_v14, 0.0  ;;  %v325_v24 = vmax.f32 %v261_v15, 0.0 }
  0x30   :  { %v266_v25 = vadd.f32 %v617_v7, %v195_v16  ;;  %v267_v26 = vadd.f32 %v617_v7, %v196_v17  ;;  %v326_v29 = vmax.f32 %v262_v18, 0.0  ;;  %v327_v30 = vmax.f32 %v263_v19, 0.0 }
  0x31   :  { %v328_v31 = vmax.f32 %v264_v20, 0.0  ;;  %v329_v32 = vmax.f32 %v265_v21, 0.0  ;;  %388 = vst [vmem:[%s1026_s3 + $0x140] sm:$0xff] %v324_v23  ;;  %389 = vst [vmem:[%s1026_s3 + $0x148] sm:$0xff] %v325_v24  ;;  %v516_v36 = vunpack.c.l.bf16 %v569_v22  ;;  %v517_v37 = vunpack.c.h.bf16 %v569_v22 }
  0x32   :  { %v330_v34 = vmax.f32 %v266_v25, 0.0  ;;  %v331_v35 = vmax.f32 %v267_v26, 0.0  ;;  %390 = vst [vmem:[%s1026_s3 + $0x150] sm:$0xff] %v326_v29  ;;  %391 = vst [vmem:[%s1026_s3 + $0x158] sm:$0xff] %v327_v30  ;;  %v520_v38 = vunpack.c.l.bf16 %v570_v27  ;;  %v521_v39 = vunpack.c.h.bf16 %v570_v27 }
  0x33   :  { %392 = vst [vmem:[%s1026_s3 + $0x160] sm:$0xff] %v328_v31  ;;  %393 = vst [vmem:[%s1026_s3 + $0x168] sm:$0xff] %v329_v32  ;;  %v524_v40 = vunpack.c.l.bf16 %v571_v28  ;;  %v525_v41 = vunpack.c.h.bf16 %v571_v28  ;;  %v197_v42 = vmul.f32 %v516_v36, %v603_v1  ;;  %v198_v43 = vmul.f32 %v517_v37, %v603_v1 }
  0x34   :  { %394 = vst [vmem:[%s1026_s3 + $0x170] sm:$0xff] %v330_v34  ;;  %395 = vst [vmem:[%s1026_s3 + $0x178] sm:$0xff] %v331_v35  ;;  %v528_v44 = vunpack.c.l.bf16 %v572_v33  ;;  %v529_v45 = vunpack.c.h.bf16 %v572_v33  ;;  %v199_v46 = vmul.f32 %v520_v38, %v603_v1  ;;  %v200_v47 = vmul.f32 %v521_v39, %v603_v1 }
  0x35   :  { %v201_v48 = vmul.f32 %v524_v40, %v603_v1  ;;  %v202_v49 = vmul.f32 %v525_v41, %v603_v1  ;;  %v268_v50 = vadd.f32 %v617_v7, %v197_v42  ;;  %v269_v51 = vadd.f32 %v617_v7, %v198_v43 }
  0x36   :  { %v203_v52 = vmul.f32 %v528_v44, %v603_v1  ;;  %v204_v53 = vmul.f32 %v529_v45, %v603_v1  ;;  %v270_v54 = vadd.f32 %v617_v7, %v199_v46  ;;  %v271_v55 = vadd.f32 %v617_v7, %v200_v47 }
  0x37   :  { %v272_v56 = vadd.f32 %v617_v7, %v201_v48  ;;  %v273_v57 = vadd.f32 %v617_v7, %v202_v49  ;;  %v332_v59 = vmax.f32 %v268_v50, 0.0  ;;  %v333_v60 = vmax.f32 %v269_v51, 0.0 }
  0x38   :  { %v274_v61 = vadd.f32 %v617_v7, %v203_v52  ;;  %v275_v62 = vadd.f32 %v617_v7, %v204_v53  ;;  %v334_v2 = vmax.f32 %v270_v54, 0.0  ;;  %v335_v3 = vmax.f32 %v271_v55, 0.0 }
  0x39   :  { %v336_v4 = vmax.f32 %v272_v56, 0.0  ;;  %v337_v5 = vmax.f32 %v273_v57, 0.0  ;;  %396 = vst [vmem:[%s1026_s3 + $0x180] sm:$0xff] %v332_v59  ;;  %397 = vst [vmem:[%s1026_s3 + $0x188] sm:$0xff] %v333_v60  ;;  %v532_v10 = vunpack.c.l.bf16 %v573_v58  ;;  %v533_v11 = vunpack.c.h.bf16 %v573_v58 }
  0x3a   :  { %v338_v8 = vmax.f32 %v274_v61, 0.0  ;;  %v339_v9 = vmax.f32 %v275_v62, 0.0  ;;  %398 = vst [vmem:[%s1026_s3 + $0x190] sm:$0xff] %v334_v2  ;;  %399 = vst [vmem:[%s1026_s3 + $0x198] sm:$0xff] %v335_v3  ;;  %v536_v12 = vunpack.c.l.bf16 %v574_v63  ;;  %v537_v13 = vunpack.c.h.bf16 %v574_v63 }
  0x3b   :  { %400 = vst [vmem:[%s1026_s3 + $0x1a0] sm:$0xff] %v336_v4  ;;  %401 = vst [vmem:[%s1026_s3 + $0x1a8] sm:$0xff] %v337_v5  ;;  %v540_v14 = vunpack.c.l.bf16 %v575_v0  ;;  %v541_v15 = vunpack.c.h.bf16 %v575_v0  ;;  %v205_v16 = vmul.f32 %v532_v10, %v603_v1  ;;  %v206_v17 = vmul.f32 %v533_v11, %v603_v1 }
  0x3c   :  { %402 = vst [vmem:[%s1026_s3 + $0x1b0] sm:$0xff] %v338_v8  ;;  %403 = vst [vmem:[%s1026_s3 + $0x1b8] sm:$0xff] %v339_v9  ;;  %v544_v18 = vunpack.c.l.bf16 %v576_v6  ;;  %v545_v19 = vunpack.c.h.bf16 %v576_v6  ;;  %v207_v20 = vmul.f32 %v536_v12, %v603_v1  ;;  %v208_v21 = vmul.f32 %v537_v13, %v603_v1 }
  0x3d   :  { %v209_v22 = vmul.f32 %v540_v14, %v603_v1  ;;  %v210_v23 = vmul.f32 %v541_v15, %v603_v1  ;;  %v276_v24 = vadd.f32 %v617_v7, %v205_v16  ;;  %v277_v25 = vadd.f32 %v617_v7, %v206_v17 }
  0x3e   :  { %v211_v26 = vmul.f32 %v544_v18, %v603_v1  ;;  %v212_v27 = vmul.f32 %v545_v19, %v603_v1  ;;  %v278_v28 = vadd.f32 %v617_v7, %v207_v20  ;;  %v279_v29 = vadd.f32 %v617_v7, %v208_v21 }
  0x3f   :  { %v280_v30 = vadd.f32 %v617_v7, %v209_v22  ;;  %v281_v31 = vadd.f32 %v617_v7, %v210_v23  ;;  %v340_v32 = vmax.f32 %v276_v24, 0.0  ;;  %v341_v33 = vmax.f32 %v277_v25, 0.0 }
  0x40   :  { %v282_v34 = vadd.f32 %v617_v7, %v211_v26  ;;  %v283_v35 = vadd.f32 %v617_v7, %v212_v27  ;;  %v342_v36 = vmax.f32 %v278_v28, 0.0  ;;  %v343_v37 = vmax.f32 %v279_v29, 0.0 }
  0x41   :  { %v344_v38 = vmax.f32 %v280_v30, 0.0  ;;  %v345_v39 = vmax.f32 %v281_v31, 0.0  ;;  %404 = vst [vmem:[%s1026_s3 + $0x1c0] sm:$0xff] %v340_v32  ;;  %405 = vst [vmem:[%s1026_s3 + $0x1c8] sm:$0xff] %v341_v33 }
  0x42   :  { %v346_v1 = vmax.f32 %v282_v34, 0.0  ;;  %v347_v40 = vmax.f32 %v283_v35, 0.0  ;;  %406 = vst [vmem:[%s1026_s3 + $0x1d0] sm:$0xff] %v342_v36  ;;  %407 = vst [vmem:[%s1026_s3 + $0x1d8] sm:$0xff] %v343_v37 }
  0x43   :  { %408 = vst [vmem:[%s1026_s3 + $0x1e0] sm:$0xff] %v344_v38  ;;  %409 = vst [vmem:[%s1026_s3 + $0x1e8] sm:$0xff] %v345_v39 }
  0x44   :  { %410 = vst [vmem:[%s1026_s3 + $0x1f0] sm:$0xff] %v346_v1  ;;  %411 = vst [vmem:[%s1026_s3 + $0x1f8] sm:$0xff] %v347_v40 }

// kernel: conv2d_batchnorm_relu.2
= control target key start
LH: loop header
LB: loop body
LE: loop exit
PB: predicated region body
PF: predicated region fallthrough
CT: control target
= control target key end

     0   :  { %s2476_s15 = smov 0   ;;  %s2478_s16 = smov 0   ;;  %s2817_s0 = inlined_call_operand.vmem [shape: bf16[2,288,12], index: 0, kind: input, shape index: {}]   ;;  %s2818_s1 = inlined_call_operand.vmem [shape: bf16[3,12,128], index: 1, kind: input, shape index: {}]   ;;  %s2819_s2 = inlined_call_operand.vmem [shape: bf16[2,256,128], index: 2, kind: output, shape index: {0}]   ;;  %s2820_s3 = inlined_call_operand.vmem [shape: f32[2,8,128], index: 3, kind: output, shape index: {1}]   ;;  %s2821_s4 = inlined_call_operand.vmem [shape: f32[2,8,128], index: 4, kind: output, shape index: {2}]  }
   0x1   :  { %s2480_s17 = smov 0  }
   0x2 LB: > { %s27_s18 = sadd.s32 1, %s2445_s16  ;;  %p1791_p0 = scmp.ge.s32.totalorder %s2449_s17, 1  ;;  %s2449_s17 = sphi %s2480_s17, %s15_s17   ;;  %s2445_s16 = sphi %s2478_s16, %s2823_s16   ;;  %s2441_s15 = sphi %s2476_s15, %s2822_s15  }
   0x3   : > { %p29_p1 = scmp.ge.s32.totalorder %s27_s18, 2  ;;  %p181_p2 = scmp.lt.s32.totalorder %s2449_s17, 3 }
   0x5   : > { %s2825_s18 = smov (%p29_p1, %s27_s18), 0  ;;  %p182_p3 = pnand %p1791_p0, %p181_p2 }
   0x6   : > { %v2376_v0 = vld [vmem:[%s2818_s1 + $0x8] sm:$0x3f] (!%p182_p3)   ;;  %vm456_vm0 = vcmask (!%p182_p3), 1045504   ;;  %p219_p4 = scmp.lt.s32.totalorder (!%p182_p3), %s2441_s15, 1  ;;  %v2377_v1 = vld [vmem:[%s2818_s1] sm:$0x3f] (!%p182_p3)  }
   0x7   : > { %185 = sbr.rel (%p182_p3) target bundleno = 438 (0x1b6), region = 28  ;;  %2347 = vmatprep.subr.msk.bf16.mxu1 (!%p182_p3), %vm456_vm0, %v2376_v0  ;;  %v458_v2 = vsel (!%p182_p3), %vm456_vm0, %v2376_v0, 0  ;;  %v2380_v3 = vld [vmem:[%s2818_s1 + $0x10] sm:$0x3f] (!%p182_p3)   ;;  %2348 = vmatprep.subr.msk.bf16.mxu0 (!%p182_p3), %vm456_vm0, %v2377_v1  ;;  %v755_v4 = vsel (!%p182_p3), %vm456_vm0, %v2377_v1, 0  ;;  %vm407_vm1 = vcmask (!%p182_p3), 97280  }
   0x8   : > { %2180 = vmatpush3.bf16.msra.mxu1 (!%p182_p3), %v458_v2  ;;  %2214 = vmatpush3.bf16.msra.mxu0 (!%p182_p3), %v755_v4  ;;  %v1092_v9 = vsel (!%p182_p3), %vm456_vm0, %v2380_v3, 0 }
   0x9   : > { %2349 = vmatprep.subr.msk.bf16.mxu1 (!%p182_p3), %vm456_vm0, %v2377_v1  ;;  %2350 = vmatprep.subr.msk.bf16.mxu0 (!%p182_p3), %vm456_vm0, %v2380_v3 }
   0xe   : > { %s2827_s15 = smov (!%p219_p4, %s2441_s15), 1 }
   0xf   : > { %s2351_s25 = smul.u32 144, %s2827_s15  ;;  %s2000_s29 = sshll.u32 %s2827_s15, 7 }
  0x10   : > { %s2624_s6 = scalar_lea.vmem %s2819_s2, %s2000_s29  ;;  %s1795_s7 = sshll.u32 %s2827_s15, 3 }
  0x11   : > { %s2515_s28 = scalar_lea.vmem %s2817_s0, %s2351_s25  ;;  %s237_s10 = scalar_lea.vmem %s2820_s3, %s1795_s7 }
  0x12   : > { %v2378_v5 = vld [vmem:[%s2515_s28 + $0x8] sm:$0xff]   ;;  %v2379_v6 = vld [vmem:[%s2515_s28] sm:$0xff]   ;;  %v2381_v7 = vld [vmem:[%s2515_s28 + $0x10] sm:$0xff]   ;;  %s241_s13 = scalar_lea.vmem %s2821_s4, %s1795_s7 }
  0x13   : > { %2181 = vmatprep.mubr.msk.bf16.mxu1 %vm407_vm1, %v2378_v5  ;;  %2215 = vmatprep.mubr.msk.bf16.mxu0 %vm407_vm1, %v2379_v6  ;;  %v2382_v8 = vld [vmem:[%s2515_s28 + $0x8] sm:$0xff]   ;;  %v2383_v10 = vld [vmem:[%s2515_s28 + $0x18] sm:$0xff]   ;;  %v2384_v11 = vld [vmem:[%s2515_s28 + $0x10] sm:$0xff]  }
  0x14   : > { %2182 = vmatmul.mubr.msk.bf16.vlgmr.msra.gmra.mrb[0].mxu1 %vm407_vm1, %v2381_v7  ;;  %2216 = vmatmul.mubr.msk.bf16.vlgmr.msra.gmra.mrb[0].mxu0 %vm407_vm1, %v2382_v8  ;;  %v2385_v12 = vld [vmem:[%s2515_s28 + $0x20] sm:$0xff]   ;;  %v2386_v13 = vld [vmem:[%s2515_s28 + $0x18] sm:$0xff]   ;;  %v2387_v14 = vld [vmem:[%s2515_s28 + $0x28] sm:$0xff]  }
  0x15   : > { %2282 = vmatpush3.bf16.msra.mxu1 %v755_v4  ;;  %2248 = vmatpush3.bf16.msra.mxu0 %v1092_v9  ;;  %v2388_v15 = vld [vmem:[%s2515_s28 + $0x20] sm:$0xff]   ;;  %v2389_v16 = vld [vmem:[%s2515_s28 + $0x30] sm:$0xff]   ;;  %v2390_v17 = vld [vmem:[%s2515_s28 + $0x28] sm:$0xff]  }
  0x16   : > { %2185 = vmatprep.mubr.msk.bf16.mxu1 %vm407_vm1, %v2383_v10  ;;  %2219 = vmatprep.mubr.msk.bf16.mxu0 %vm407_vm1, %v2384_v11  ;;  %v2391_v18 = vld [vmem:[%s2515_s28 + $0x38] sm:$0xff]   ;;  %v2392_v19 = vld [vmem:[%s2515_s28 + $0x30] sm:$0xff]   ;;  %v2393_v20 = vld [vmem:[%s2515_s28 + $0x40] sm:$0xff]  }
  0x17   : > { %v2394_v21 = vld [vmem:[%s2515_s28 + $0x38] sm:$0xff]   ;;  %v2395_v22 = vld [vmem:[%s2515_s28 + $0x48] sm:$0xff]   ;;  %v2396_v23 = vld [vmem:[%s2515_s28 + $0x10] sm:$0xff]  }
  0x18   : > { %v2397_v24 = vld [vmem:[%s2515_s28 + $0x50] sm:$0xff]   ;;  %v2398_v25 = vld [vmem:[%s2515_s28 + $0x18] sm:$0xff]   ;;  %v2400_v27 = vld [vmem:[%s2515_s28 + $0x20] sm:$0xff]  }
  0x19   : > { %v2399_v26 = vld [vmem:[%s2515_s28 + $0x58] sm:$0xff]   ;;  %v2401_v28 = vld [vmem:[%s2515_s28 + $0x60] sm:$0xff]   ;;  %v2402_v29 = vld [vmem:[%s2515_s28 + $0x28] sm:$0xff]  }
  0x1a   : > { %v2403_v30 = vld [vmem:[%s2515_s28 + $0x68] sm:$0xff]   ;;  %v2404_v31 = vld [vmem:[%s2515_s28 + $0x30] sm:$0xff]   ;;  %v2406_v33 = vld [vmem:[%s2515_s28 + $0x38] sm:$0xff]  }
  0x1b   : > { %v2405_v32 = vld [vmem:[%s2515_s28 + $0x70] sm:$0xff]   ;;  %v2407_v34 = vld [vmem:[%s2515_s28 + $0x78] sm:$0xff]   ;;  %v2408_v35 = vld [vmem:[%s2515_s28 + $0x40] sm:$0xff]  }
  0x1c   : > { %2186 = vmatmul.mubr.msk.bf16.gmra.mrb[4].mxu1 %vm407_vm1, %v2385_v12  ;;  %2220 = vmatmul.mubr.msk.bf16.gmra.mrb[4].mxu0 %vm407_vm1, %v2386_v13  ;;  %v2409_v36 = vld [vmem:[%s2515_s28 + $0x80] sm:$0xff]   ;;  %v2410_v37 = vld [vmem:[%s2515_s28 + $0x48] sm:$0xff]   ;;  %v2412_v39 = vld [vmem:[%s2515_s28 + $0x50] sm:$0xff]  }
  0x1d   : > { %2189 = vmatprep.mubr.msk.bf16.mxu1 %vm407_vm1, %v2387_v14  ;;  %2223 = vmatprep.mubr.msk.bf16.mxu0 %vm407_vm1, %v2388_v15  ;;  %v2411_v38 = vld [vmem:[%s2515_s28 + $0x40] sm:$0xff]   ;;  %v2413_v40 = vld [vmem:[%s2515_s28 + $0x48] sm:$0xff]   ;;  %v2414_v41 = vld [vmem:[%s2515_s28 + $0x58] sm:$0xff]  }
  0x1e   : > { %v2415_v42 = vld [vmem:[%s2515_s28 + $0x50] sm:$0xff]   ;;  %v2416_v43 = vld [vmem:[%s2515_s28 + $0x60] sm:$0xff]   ;;  %v2417_v44 = vld [vmem:[%s2515_s28 + $0x58] sm:$0xff]  }
  0x1f   : > { %v2418_v45 = vld [vmem:[%s2515_s28 + $0x68] sm:$0xff]   ;;  %v2419_v46 = vld [vmem:[%s2515_s28 + $0x60] sm:$0xff]   ;;  %v2420_v47 = vld [vmem:[%s2515_s28 + $0x70] sm:$0xff]  }
  0x20   : > { %v2421_v48 = vld [vmem:[%s2515_s28 + $0x68] sm:$0xff]   ;;  %v2422_v49 = vld [vmem:[%s2515_s28 + $0x78] sm:$0xff]   ;;  %v2423_v50 = vld [vmem:[%s2515_s28 + $0x70] sm:$0xff]  }
  0x21   : > { %v2424_v51 = vld [vmem:[%s2515_s28 + $0x80] sm:$0xff]   ;;  %v2425_v52 = vld [vmem:[%s2515_s28 + $0x78] sm:$0xff]   ;;  %v2426_v53 = vld [vmem:[%s2515_s28 + $0x88] sm:$0xff]  }
  0x24   : > { %2190 = vmatmul.mubr.msk.bf16.gmra.mrb[8].mxu1 %vm407_vm1, %v2389_v16  ;;  %2224 = vmatmul.mubr.msk.bf16.gmra.mrb[8].mxu0 %vm407_vm1, %v2390_v17 }
  0x25   : > { %2193 = vmatprep.mubr.msk.bf16.mxu1 %vm407_vm1, %v2391_v18  ;;  %2227 = vmatprep.mubr.msk.bf16.mxu0 %vm407_vm1, %v2392_v19 }
  0x2c   : > { %2194 = vmatmul.mubr.msk.bf16.gmra.mrb[12].mxu1 %vm407_vm1, %v2393_v20  ;;  %2228 = vmatmul.mubr.msk.bf16.gmra.mrb[12].mxu0 %vm407_vm1, %v2394_v21 }
  0x2d   : > { %2197 = vmatprep.mubr.msk.bf16.mxu1 %vm407_vm1, %v2395_v22  ;;  %2249 = vmatprep.mubr.msk.bf16.mxu0 %vm407_vm1, %v2396_v23 }
  0x34   : > { %2198 = vmatmul.mubr.msk.bf16.gmra.mrb[16].mxu1 %vm407_vm1, %v2397_v24  ;;  %2250 = vmatmul.mubr.msk.bf16.vlgmr.msra.gmra.mrb[0].mxu0 %vm407_vm1, %v2398_v25 }
  0x35   : > { %2201 = vmatprep.mubr.msk.bf16.mxu1 %vm407_vm1, %v2399_v26  ;;  %2253 = vmatprep.mubr.msk.bf16.mxu0 %vm407_vm1, %v2400_v27 }
  0x3c   : > { %2202 = vmatmul.mubr.msk.bf16.gmra.mrb[20].mxu1 %vm407_vm1, %v2401_v28  ;;  %2254 = vmatmul.mubr.msk.bf16.gmra.mrb[4].mxu0 %vm407_vm1, %v2402_v29 }
  0x3d   : > { %2205 = vmatprep.mubr.msk.bf16.mxu1 %vm407_vm1, %v2403_v30  ;;  %2257 = vmatprep.mubr.msk.bf16.mxu0 %vm407_vm1, %v2404_v31 }
  0x44   : > { %2206 = vmatmul.mubr.msk.bf16.gmra.mrb[24].mxu1 %vm407_vm1, %v2405_v32  ;;  %2258 = vmatmul.mubr.msk.bf16.gmra.mrb[8].mxu0 %vm407_vm1, %v2406_v33 }
  0x45   : > { %2209 = vmatprep.mubr.msk.bf16.mxu1 %vm407_vm1, %v2407_v34  ;;  %2261 = vmatprep.mubr.msk.bf16.mxu0 %vm407_vm1, %v2408_v35 }
  0x4c   : > { %2210 = vmatmul.mubr.msk.bf16.gmra.mrb[28].mxu1 %vm407_vm1, %v2409_v36  ;;  %2262 = vmatmul.mubr.msk.bf16.gmra.mrb[12].mxu0 %vm407_vm1, %v2410_v37 }
  0x4d   : > { %2231 = vmatprep.mubr.msk.bf16.mxu1 %vm407_vm1, %v2411_v38  ;;  %2265 = vmatprep.mubr.msk.bf16.mxu0 %vm407_vm1, %v2412_v39 }
  0x54   : > { %2232 = vmatmul.mubr.msk.bf16.vlgmr.msra.gmra.mrb[16].mxu1 %vm407_vm1, %v2413_v40  ;;  %2266 = vmatmul.mubr.msk.bf16.gmra.mrb[16].mxu0 %vm407_vm1, %v2414_v41 }
  0x55   : > { %2235 = vmatprep.mubr.msk.bf16.mxu1 %vm407_vm1, %v2415_v42  ;;  %2269 = vmatprep.mubr.msk.bf16.mxu0 %vm407_vm1, %v2416_v43 }
  0x5c   : > { %2236 = vmatmul.mubr.msk.bf16.gmra.mrb[20].mxu1 %vm407_vm1, %v2417_v44  ;;  %2270 = vmatmul.mubr.msk.bf16.gmra.mrb[20].mxu0 %vm407_vm1, %v2418_v45 }
  0x5d   : > { %2239 = vmatprep.mubr.msk.bf16.mxu1 %vm407_vm1, %v2419_v46  ;;  %2273 = vmatprep.mubr.msk.bf16.mxu0 %vm407_vm1, %v2420_v47 }
  0x64   : > { %2240 = vmatmul.mubr.msk.bf16.gmra.mrb[24].mxu1 %vm407_vm1, %v2421_v48  ;;  %2274 = vmatmul.mubr.msk.bf16.gmra.mrb[24].mxu0 %vm407_vm1, %v2422_v49 }
  0x65   : > { %2243 = vmatprep.mubr.msk.bf16.mxu1 %vm407_vm1, %v2423_v50  ;;  %2277 = vmatprep.mubr.msk.bf16.mxu0 %vm407_vm1, %v2424_v51 }
  0x6c   : > { %2244 = vmatmul.mubr.msk.bf16.gmra.mrb[28].mxu1 %vm407_vm1, %v2425_v52  ;;  %2278 = vmatmul.mubr.msk.bf16.gmra.mrb[28].mxu0 %vm407_vm1, %v2426_v53 }
  0xe7   : > { %v2183_v54 = vpop.f32.mrb[0].mxu1 }
  0xe8   : > { %v494_v55 = vpop.f32.mrb[1].mxu1 }
  0xe9   : > { %v2184_v56 = vpop.f32.mrb[2].mxu1 }
  0xea   : > { %v497_v57 = vpop.f32.mrb[3].mxu1 }
  0xef   : > { %v2187_v58 = vpop.f32.mrb[4].mxu1 }
  0xf0   : > { %v510_v59 = vpop.f32.mrb[5].mxu1 }
  0xf1   : > { %v2188_v60 = vpop.f32.mrb[6].mxu1 }
  0xf2   : > { %v513_v61 = vpop.f32.mrb[7].mxu1 }
  0xf7   : > { %v2191_v62 = vpop.f32.mrb[8].mxu1 }
  0xf8   : > { %v526_v63 = vpop.f32.mrb[9].mxu1 }
  0xf9   : > { %v2192_v0 = vpop.f32.mrb[10].mxu1 }
  0xfa   : > { %v529_v1 = vpop.f32.mrb[11].mxu1 }
  0xff   : > { %v2195_v2 = vpop.f32.mrb[12].mxu1 }
 0x100   : > { %v542_v3 = vpop.f32.mrb[13].mxu1 }
 0x101   : > { %v2196_v4 = vpop.f32.mrb[14].mxu1 }
 0x102   : > { %v545_v5 = vpop.f32.mrb[15].mxu1 }
 0x107   : > { %v2251_v6 = vpop.f32.mrb[0].mxu0 }
 0x108   : > { %v2614_v7 = vadd.f32 %v2251_v6, %v2183_v54  ;;  %v1128_v8 = vpop.f32.mrb[1].mxu0 }
 0x109   : > { %v2617_v9 = vadd.f32 %v1128_v8, %v494_v55  ;;  %v2252_v10 = vpop.f32.mrb[2].mxu0 }
 0x10a   : > { %v2619_v11 = vadd.f32 %v2252_v10, %v2184_v56  ;;  %v1131_v12 = vpop.f32.mrb[3].mxu0 }
 0x10b   : > { %v2626_v13 = vadd.f32 %v1131_v12, %v497_v57 }
 0x10c   : > { %v2041_v14 = vpack.c.bf16 %v2619_v11, %v2614_v7 }
 0x10d   : > { %v2036_v15 = vpack.c.bf16 %v2626_v13, %v2617_v9  ;;  %v1447_v16 = vadd.f32 %v2626_v13, %v2617_v9 }
 0x10e   : > { %2113 = vst [vmem:[%s2624_s6 + $0x8] sm:$0xff] %v2041_v14  }
 0x10f   : > { %2037 = vst [vmem:[%s2624_s6] sm:$0xff] %v2036_v15   ;;  %v1448_v17 = vadd.f32 %v2614_v7, %v1447_v16  ;;  %v2255_v18 = vpop.f32.mrb[4].mxu0 }
 0x110   : > { %v2637_v19 = vadd.f32 %v2255_v18, %v2187_v58  ;;  %v1144_v20 = vpop.f32.mrb[5].mxu0 }
 0x111   : > { %v2639_v21 = vadd.f32 %v1144_v20, %v510_v59  ;;  %v1449_v22 = vadd.f32 %v2619_v11, %v1448_v17  ;;  %v2256_v23 = vpop.f32.mrb[6].mxu0 }
 0x112   : > { %v2642_v24 = vadd.f32 %v2256_v23, %v2188_v60  ;;  %v1147_v25 = vpop.f32.mrb[7].mxu0 }
 0x113   : > { %v1450_v26 = vadd.f32 %v2639_v21, %v1449_v22  ;;  %v2645_v27 = vadd.f32 %v1147_v25, %v513_v61 }
 0x114   : > { %v2051_v28 = vpack.c.bf16 %v2642_v24, %v2637_v19 }
 0x115   : > { %v2046_v29 = vpack.c.bf16 %v2645_v27, %v2639_v21  ;;  %v1451_v30 = vadd.f32 %v2645_v27, %v1450_v26 }
 0x116   : > { %2115 = vst [vmem:[%s2624_s6 + $0x18] sm:$0xff] %v2051_v28  }
 0x117   : > { %2114 = vst [vmem:[%s2624_s6 + $0x10] sm:$0xff] %v2046_v29   ;;  %v1452_v31 = vadd.f32 %v2637_v19, %v1451_v30  ;;  %v2259_v32 = vpop.f32.mrb[8].mxu0 }
 0x118   : > { %v2655_v33 = vadd.f32 %v2259_v32, %v2191_v62  ;;  %v1160_v34 = vpop.f32.mrb[9].mxu0 }
 0x119   : > { %v2657_v35 = vadd.f32 %v1160_v34, %v526_v63  ;;  %v1453_v36 = vadd.f32 %v2642_v24, %v1452_v31  ;;  %v2260_v37 = vpop.f32.mrb[10].mxu0 }
 0x11a   : > { %v2660_v38 = vadd.f32 %v2260_v37, %v2192_v0  ;;  %v1163_v39 = vpop.f32.mrb[11].mxu0 }
 0x11b   : > { %v1454_v40 = vadd.f32 %v2657_v35, %v1453_v36  ;;  %v2663_v41 = vadd.f32 %v1163_v39, %v529_v1 }
 0x11c   : > { %v2061_v42 = vpack.c.bf16 %v2660_v38, %v2655_v33 }
 0x11d   : > { %v2056_v43 = vpack.c.bf16 %v2663_v41, %v2657_v35  ;;  %v1455_v44 = vadd.f32 %v2663_v41, %v1454_v40 }
 0x11e   : > { %2117 = vst [vmem:[%s2624_s6 + $0x28] sm:$0xff] %v2061_v42  }
 0x11f   : > { %2116 = vst [vmem:[%s2624_s6 + $0x20] sm:$0xff] %v2056_v43   ;;  %v1456_v45 = vadd.f32 %v2655_v33, %v1455_v44  ;;  %v2263_v46 = vpop.f32.mrb[12].mxu0 }
 0x120   : > { %v2673_v47 = vadd.f32 %v2263_v46, %v2195_v2  ;;  %v1176_v48 = vpop.f32.mrb[13].mxu0 }
 0x121   : > { %v2675_v49 = vadd.f32 %v1176_v48, %v542_v3  ;;  %v1457_v50 = vadd.f32 %v2660_v38, %v1456_v45  ;;  %v2264_v51 = vpop.f32.mrb[14].mxu0 }
 0x122   : > { %v2678_v52 = vadd.f32 %v2264_v51, %v2196_v4  ;;  %v1179_v53 = vpop.f32.mrb[15].mxu0 }
 0x123   : > { %v1458_v54 = vadd.f32 %v2675_v49, %v1457_v50  ;;  %v2681_v55 = vadd.f32 %v1179_v53, %v545_v5 }
 0x124   : > { %v2071_v56 = vpack.c.bf16 %v2678_v52, %v2673_v47 }
 0x125   : > { %v2066_v57 = vpack.c.bf16 %v2681_v55, %v2675_v49  ;;  %v1459_v58 = vadd.f32 %v2681_v55, %v1458_v54 }
 0x126   : > { %2119 = vst [vmem:[%s2624_s6 + $0x38] sm:$0xff] %v2071_v56  }
 0x127   : > { %v2233_v59 = vpop.f32.mrb[16].mxu1  ;;  %2118 = vst [vmem:[%s2624_s6 + $0x30] sm:$0xff] %v2066_v57   ;;  %v1460_v60 = vadd.f32 %v2673_v47, %v1459_v58  ;;  %v2267_v61 = vpop.f32.mrb[16].mxu0 }
 0x128   : > { %v855_v62 = vpop.f32.mrb[17].mxu1  ;;  %v2691_v63 = vadd.f32 %v2267_v61, %v2233_v59  ;;  %v1192_v0 = vpop.f32.mrb[17].mxu0 }
 0x129   : > { %v2234_v1 = vpop.f32.mrb[18].mxu1  ;;  %v2693_v2 = vadd.f32 %v1192_v0, %v855_v62  ;;  %v1461_v3 = vadd.f32 %v2678_v52, %v1460_v60  ;;  %v2268_v4 = vpop.f32.mrb[18].mxu0 }
 0x12a   : > { %v858_v5 = vpop.f32.mrb[19].mxu1  ;;  %v2696_v6 = vadd.f32 %v2268_v4, %v2234_v1  ;;  %v1195_v8 = vpop.f32.mrb[19].mxu0 }
 0x12b   : > { %v1462_v10 = vadd.f32 %v2693_v2, %v1461_v3  ;;  %v2699_v12 = vadd.f32 %v1195_v8, %v858_v5 }
 0x12c   : > { %v2081_v14 = vpack.c.bf16 %v2696_v6, %v2691_v63 }
 0x12d   : > { %v2076_v15 = vpack.c.bf16 %v2699_v12, %v2693_v2  ;;  %v1463_v16 = vadd.f32 %v2699_v12, %v1462_v10 }
 0x12e   : > { %2121 = vst [vmem:[%s2624_s6 + $0x48] sm:$0xff] %v2081_v14  }
 0x12f   : > { %v2237_v17 = vpop.f32.mrb[20].mxu1  ;;  %2120 = vst [vmem:[%s2624_s6 + $0x40] sm:$0xff] %v2076_v15   ;;  %v1464_v18 = vadd.f32 %v2691_v63, %v1463_v16  ;;  %v2271_v20 = vpop.f32.mrb[20].mxu0 }
 0x130   : > { %v871_v22 = vpop.f32.mrb[21].mxu1  ;;  %v2709_v23 = vadd.f32 %v2271_v20, %v2237_v17  ;;  %v1208_v25 = vpop.f32.mrb[21].mxu0 }
 0x131   : > { %v2238_v26 = vpop.f32.mrb[22].mxu1  ;;  %v2711_v28 = vadd.f32 %v1208_v25, %v871_v22  ;;  %v1465_v29 = vadd.f32 %v2696_v6, %v1464_v18  ;;  %v2272_v30 = vpop.f32.mrb[22].mxu0 }
 0x132   : > { %v874_v31 = vpop.f32.mrb[23].mxu1  ;;  %v2714_v32 = vadd.f32 %v2272_v30, %v2238_v26  ;;  %v1211_v34 = vpop.f32.mrb[23].mxu0 }
 0x133   : > { %v1466_v36 = vadd.f32 %v2711_v28, %v1465_v29  ;;  %v2717_v37 = vadd.f32 %v1211_v34, %v874_v31 }
 0x134   : > { %v2091_v39 = vpack.c.bf16 %v2714_v32, %v2709_v23 }
 0x135   : > { %v2086_v40 = vpack.c.bf16 %v2717_v37, %v2711_v28  ;;  %v1467_v42 = vadd.f32 %v2717_v37, %v1466_v36 }
 0x136   : > { %2123 = vst [vmem:[%s2624_s6 + $0x58] sm:$0xff] %v2091_v39  }
 0x137   : > { %v2241_v43 = vpop.f32.mrb[24].mxu1  ;;  %2122 = vst [vmem:[%s2624_s6 + $0x50] sm:$0xff] %v2086_v40   ;;  %v1468_v44 = vadd.f32 %v2709_v23, %v1467_v42  ;;  %v2275_v45 = vpop.f32.mrb[24].mxu0 }
 0x138   : > { %v887_v46 = vpop.f32.mrb[25].mxu1  ;;  %v2727_v48 = vadd.f32 %v2275_v45, %v2241_v43  ;;  %v1224_v50 = vpop.f32.mrb[25].mxu0 }
 0x139   : > { %v2242_v51 = vpop.f32.mrb[26].mxu1  ;;  %v2308_v53 = vadd.f32 %v1224_v50, %v887_v46  ;;  %v1469_v54 = vadd.f32 %v2714_v32, %v1468_v44  ;;  %v2276_v56 = vpop.f32.mrb[26].mxu0 }
 0x13a   : > { %v890_v57 = vpop.f32.mrb[27].mxu1  ;;  %v2309_v58 = vadd.f32 %v2276_v56, %v2242_v51  ;;  %v1227_v59 = vpop.f32.mrb[27].mxu0 }
 0x13b   : > { %v1470_v60 = vadd.f32 %v2308_v53, %v1469_v54  ;;  %v2310_v61 = vadd.f32 %v1227_v59, %v890_v57 }
 0x13c   : > { %v2101_v62 = vpack.c.bf16 %v2309_v58, %v2727_v48 }
 0x13d   : > { %v2096_v0 = vpack.c.bf16 %v2310_v61, %v2308_v53  ;;  %v1471_v1 = vadd.f32 %v2310_v61, %v1470_v60 }
 0x13e   : > { %2125 = vst [vmem:[%s2624_s6 + $0x68] sm:$0xff] %v2101_v62  }
 0x13f   : > { %v2245_v3 = vpop.f32.mrb[28].mxu1  ;;  %2124 = vst [vmem:[%s2624_s6 + $0x60] sm:$0xff] %v2096_v0   ;;  %v1472_v4 = vadd.f32 %v2727_v48, %v1471_v1  ;;  %v2279_v5 = vpop.f32.mrb[28].mxu0 }
 0x140   : > { %v903_v8 = vpop.f32.mrb[29].mxu1  ;;  %v2311_v10 = vadd.f32 %v2279_v5, %v2245_v3  ;;  %v1240_v14 = vpop.f32.mrb[29].mxu0 }
 0x141   : > { %v2246_v15 = vpop.f32.mrb[30].mxu1  ;;  %v2312_v16 = vadd.f32 %v1240_v14, %v903_v8  ;;  %v1473_v17 = vadd.f32 %v2309_v58, %v1472_v4  ;;  %v2280_v18 = vpop.f32.mrb[30].mxu0 }
 0x142   : > { %v906_v20 = vpop.f32.mrb[31].mxu1  ;;  %v2313_v22 = vadd.f32 %v2280_v18, %v2246_v15  ;;  %v1243_v25 = vpop.f32.mrb[31].mxu0 }
 0x143   : > { %v1474_v26 = vadd.f32 %v2312_v16, %v1473_v17  ;;  %v2314_v29 = vadd.f32 %v1243_v25, %v906_v20 }
 0x144   : > { %v2111_v30 = vpack.c.bf16 %v2313_v22, %v2311_v10 }
 0x145   : > { %v2106_v31 = vpack.c.bf16 %v2314_v29, %v2312_v16  ;;  %v1475_v34 = vadd.f32 %v2314_v29, %v1474_v26 }
 0x146   : > { %2127 = vst [vmem:[%s2624_s6 + $0x78] sm:$0xff] %v2111_v30  }
 0x147   : > { %2126 = vst [vmem:[%s2624_s6 + $0x70] sm:$0xff] %v2106_v31   ;;  %v1476_v36 = vadd.f32 %v2311_v10, %v1475_v34 }
 0x149   : > { %v1477_v39 = vadd.f32 %v2313_v22, %v1476_v36 }
 0x14b   : > { %v1478_v40 = vrot.slane %v1477_v39, 4 }
 0x14d   : > { %v1479_v42 = vadd.f32 %v1478_v40, %v1477_v39 }
 0x14f   : > { %v1480_v43 = vrot.slane %v1479_v42, 2 }
 0x151   : > { %v1481_v44 = vadd.f32 %v1480_v43, %v1479_v42 }
 0x153   : > { %v1482_v45 = vrot.slane %v1481_v44, 1 }
 0x155   : > { %v1483_v46 = vadd.f32 %v1482_v45, %v1481_v44 }
 0x157   : > { %v1484_v50 = vmul.f32 0.00390625, %v1483_v46  ;;  %1590 = vst [vmem:[#allocation2] sm:$0x1] %v1483_v46 }
 0x159   : > { %v1493_v51 = vsub.f32 %v2657_v35, %v1484_v50  ;;  %v1494_v54 = vsub.f32 %v2663_v41, %v1484_v50  ;;  %v1495_v56 = vsub.f32 %v2655_v33, %v1484_v50  ;;  %v1496_v57 = vsub.f32 %v2660_v38, %v1484_v50 }
 0x15a   : > { %v1497_v59 = vsub.f32 %v2675_v49, %v1484_v50  ;;  %v1498_v60 = vsub.f32 %v2681_v55, %v1484_v50  ;;  %v1499_v62 = vsub.f32 %v2673_v47, %v1484_v50  ;;  %v1500_v0 = vsub.f32 %v2678_v52, %v1484_v50 }
 0x15b   : > { %v1501_v35 = vsub.f32 %v2693_v2, %v1484_v50  ;;  %v1502_v41 = vsub.f32 %v2699_v12, %v1484_v50  ;;  %v1503_v33 = vsub.f32 %v2691_v63, %v1484_v50  ;;  %v1504_v38 = vsub.f32 %v2696_v6, %v1484_v50 }
 0x15c   : > { %v1505_v1 = vsub.f32 %v2711_v28, %v1484_v50  ;;  %v1506_v3 = vsub.f32 %v2717_v37, %v1484_v50  ;;  %v1507_v49 = vsub.f32 %v2709_v23, %v1484_v50  ;;  %v2758_v55 = vsub.f32 %v2714_v32, %v1484_v50 }
 0x15d   : > { %v2760_v4 = vsub.f32 %v2308_v53, %v1484_v50  ;;  %v2762_v52 = vsub.f32 %v2310_v61, %v1484_v50  ;;  %v2765_v2 = vsub.f32 %v2727_v48, %v1484_v50  ;;  %v2767_v63 = vsub.f32 %v2309_v58, %v1484_v50 }
 0x15e   : > { %v1996_v47 = vld [vmem:[#allocation2] ss:$0 sm:$0xff]  ;;  %v2769_v6 = vsub.f32 %v2312_v16, %v1484_v50  ;;  %v2771_v12 = vsub.f32 %v2314_v29, %v1484_v50  ;;  %v2773_v28 = vsub.f32 %v2311_v10, %v1484_v50  ;;  %v2775_v23 = vsub.f32 %v2313_v22, %v1484_v50 }
 0x15f   : > { %1629 = vst [vmem:[%s237_s10] sm:$0xff] %v1996_v47  ;;  %v1485_v32 = vsub.f32 %v2617_v9, %v1484_v50  ;;  %v1486_v37 = vsub.f32 %v2626_v13, %v1484_v50  ;;  %v1487_v53 = vsub.f32 %v2614_v7, %v1484_v50  ;;  %v1488_v58 = vsub.f32 %v2619_v11, %v1484_v50 }
 0x160   : > { %v1489_v5 = vsub.f32 %v2639_v21, %v1484_v50  ;;  %v1490_v15 = vsub.f32 %v2645_v27, %v1484_v50  ;;  %v1491_v17 = vsub.f32 %v2637_v19, %v1484_v50  ;;  %v1492_v13 = vsub.f32 %v2642_v24, %v1484_v50 }
 0x161   : > { %v1517_v61 = vmul.f32 %v1485_v32, %v1485_v32  ;;  %v1518_v48 = vmul.f32 %v1486_v37, %v1486_v37  ;;  %v1519_v8 = vmul.f32 %v1487_v53, %v1487_v53  ;;  %v1520_v10 = vmul.f32 %v1488_v58, %v1488_v58 }
 0x162   : > { %v1521_v18 = vmul.f32 %v1489_v5, %v1489_v5  ;;  %v1522_v20 = vmul.f32 %v1490_v15, %v1490_v15  ;;  %v1523_v22 = vmul.f32 %v1491_v17, %v1491_v17  ;;  %v1524_v26 = vmul.f32 %v1492_v13, %v1492_v13 }
 0x163   : > { %v1549_v14 = vadd.f32 %v1518_v48, %v1517_v61  ;;  %v1525_v29 = vmul.f32 %v1493_v51, %v1493_v51  ;;  %v1526_v30 = vmul.f32 %v1494_v54, %v1494_v54  ;;  %v1527_v34 = vmul.f32 %v1495_v56, %v1495_v56 }
 0x164   : > { %v1528_v36 = vmul.f32 %v1496_v57, %v1496_v57  ;;  %v1529_v40 = vmul.f32 %v1497_v59, %v1497_v59  ;;  %v1530_v42 = vmul.f32 %v1498_v60, %v1498_v60  ;;  %v1531_v44 = vmul.f32 %v1499_v62, %v1499_v62 }
 0x165   : > { %v1550_v16 = vadd.f32 %v1549_v14, %v1519_v8  ;;  %v1532_v45 = vmul.f32 %v1500_v0, %v1500_v0  ;;  %v1533_v50 = vmul.f32 %v1501_v35, %v1501_v35  ;;  %v1534_v32 = vmul.f32 %v1502_v41, %v1502_v41 }
 0x166   : > { %v1535_v51 = vmul.f32 %v1503_v33, %v1503_v33  ;;  %v1536_v54 = vmul.f32 %v1504_v38, %v1504_v38  ;;  %v1537_v56 = vmul.f32 %v1505_v1, %v1505_v1  ;;  %v1538_v57 = vmul.f32 %v1506_v3, %v1506_v3 }
 0x167   : > { %v1551_v9 = vadd.f32 %v1550_v16, %v1520_v10  ;;  %v1539_v59 = vmul.f32 %v1507_v49, %v1507_v49  ;;  %v1540_v60 = vmul.f32 %v2758_v55, %v2758_v55  ;;  %v1541_v0 = vmul.f32 %v2760_v4, %v2760_v4 }
 0x168   : > { %v1542_v41 = vmul.f32 %v2762_v52, %v2762_v52  ;;  %v1543_v38 = vmul.f32 %v2765_v2, %v2765_v2  ;;  %v1544_v3 = vmul.f32 %v2767_v63, %v2767_v63  ;;  %v1545_v55 = vmul.f32 %v2769_v6, %v2769_v6 }
 0x169   : > { %v1552_v7 = vadd.f32 %v1551_v9, %v1521_v18  ;;  %v1546_v4 = vmul.f32 %v2771_v12, %v2771_v12  ;;  %v1547_v52 = vmul.f32 %v2773_v28, %v2773_v28  ;;  %v1548_v2 = vmul.f32 %v2775_v23, %v2775_v23 }
 0x16b   : > { %v1553_v25 = vadd.f32 %v1552_v7, %v1522_v20 }
 0x16d   : > { %v1554_v11 = vadd.f32 %v1553_v25, %v1523_v22 }
 0x16f   : > { %v1555_v21 = vadd.f32 %v1554_v11, %v1524_v26 }
 0x171   : > { %v1556_v31 = vadd.f32 %v1555_v21, %v1525_v29 }
 0x173   : > { %v1557_v27 = vadd.f32 %v1556_v31, %v1526_v30 }
 0x175   : > { %v1558_v39 = vadd.f32 %v1557_v27, %v1527_v34 }
 0x177   : > { %v1559_v19 = vadd.f32 %v1558_v39, %v1528_v36 }
 0x179   : > { %v1560_v43 = vadd.f32 %v1559_v19, %v1529_v40 }
 0x17b   : > { %v1561_v24 = vadd.f32 %v1560_v43, %v1530_v42 }
 0x17d   : > { %v1562_v46 = vadd.f32 %v1561_v24, %v1531_v44 }
 0x17f   : > { %v1563_v47 = vadd.f32 %v1562_v46, %v1532_v45 }
 0x181   : > { %v1564_v37 = vadd.f32 %v1563_v47, %v1533_v50 }
 0x183   : > { %v1565_v53 = vadd.f32 %v1564_v37, %v1534_v32 }
 0x185   : > { %v1566_v61 = vadd.f32 %v1565_v53, %v1535_v51 }
 0x187   : > { %v1567_v48 = vadd.f32 %v1566_v61, %v1536_v54 }
 0x189   : > { %v1568_v58 = vadd.f32 %v1567_v48, %v1537_v56 }
 0x18b   : > { %v1569_v5 = vadd.f32 %v1568_v58, %v1538_v57 }
 0x18d   : > { %v1570_v62 = vadd.f32 %v1569_v5, %v1539_v59 }
 0x18f   : > { %v1571_v35 = vadd.f32 %v1570_v62, %v1540_v60 }
 0x191   : > { %v1572_v33 = vadd.f32 %v1571_v35, %v1541_v0 }
 0x193   : > { %v1573_v1 = vadd.f32 %v1572_v33, %v1542_v41 }
 0x195   : > { %v1574_v49 = vadd.f32 %v1573_v1, %v1543_v38 }
 0x197   : > { %v1575_v8 = vadd.f32 %v1574_v49, %v1544_v3 }
 0x199   : > { %v1576_v14 = vadd.f32 %v1575_v8, %v1545_v55 }
 0x19b   : > { %v1577_v15 = vadd.f32 %v1576_v14, %v1546_v4 }
 0x19d   : > { %v1578_v10 = vadd.f32 %v1577_v15, %v1547_v52 }
 0x19f   : > { %v1579_v16 = vadd.f32 %v1578_v10, %v1548_v2 }
 0x1a1   : > { %v1580_v63 = vrot.slane %v1579_v16, 4 }
 0x1a3   : > { %v1581_v17 = vadd.f32 %v1580_v63, %v1579_v16 }
 0x1a5   : > { %v1582_v18 = vrot.slane %v1581_v17, 2 }
 0x1a7   : > { %v1583_v9 = vadd.f32 %v1582_v18, %v1581_v17 }
 0x1a9   : > { %v1584_v6 = vrot.slane %v1583_v9, 1 }
 0x1ab   : > { %v1585_v13 = vadd.f32 %v1584_v6, %v1583_v9 }
 0x1ad   : > { %1591 = vst [vmem:[#allocation3] sm:$0x1] %v1585_v13 }
 0x1b4   : > { %v1997_v12 = vld [vmem:[#allocation3] ss:$0 sm:$0xff] }
 0x1b5   : > { %1637 = vst [vmem:[%s241_s13] sm:$0xff] %v1997_v12 }
 0x1b6 PF: > { %s15_s17 = sadd.s32 1, %s2449_s17   ;;  %s2822_s15 = smov %s2445_s16 }
 0x1b7   : > { %p12_p5 = scmp.ge.s32.totalorder %s15_s17, 4   ;;  %s2823_s16 = smov %s2825_s18 }
 0x1b9   :  { %14 = sbr.rel (!%p12_p5) target bundleno = 2 (0x2), region = 99 }

</bundles_post_ra>
